<compile_context>
chip_gen: v7x
topology: tpu7x:2x2x1
jax: 0.10.0
libtpu: 0.0.40
codegen_flags: <defaults>
</compile_context>

<pallas_src>
import functools

import jax
import jax.numpy as jnp
from jax.experimental import pallas as pl
from jax.experimental.pallas import tpu as pltpu


# ----------------------------------------------------------------------------
# Model configuration (small, consistent with the module's __init__)
# ----------------------------------------------------------------------------
N_QUANTIZE = 32
N_AUX = 16
N_RESCH = 32
N_SKIPCH = 32
DILATION_DEPTH = 3
DILATION_REPEAT = 2
KERNEL_SIZE = 2
DILATIONS = tuple(2 ** i for i in range(DILATION_DEPTH)) * DILATION_REPEAT  # (1,2,4,1,2,4)
RECEPTIVE_FIELD = (KERNEL_SIZE - 1) * sum(DILATIONS) + 1

B = 2
T = 32

_HI = jax.lax.Precision.HIGHEST


# ----------------------------------------------------------------------------
# Fused Pallas kernel: entire WaveNet forward in one program
# ----------------------------------------------------------------------------
def _wavenet_fused_kernel(x_ref, h_ref, wgate_ref, bgate_ref, wsr_ref, bsr_ref,
                          wp1_ref, bp1_ref, wp2_ref, bp2_ref, o_ref,
                          *, batch, seq, dilations):
    # x_ref:     (B*T, Cres)            front-end activation (residual stream)
    # h_ref:     (B*T, n_aux)           aux features
    # wgate_ref: (L, 2*Cres+n_aux, 2*Cres)   [wds0|wdt0 ; wds1|wdt1 ; was|wat]
    # bgate_ref: (L, 1, 2*Cres)              [bds+bas | bdt+bat]
    # wsr_ref:   (L, Cres, Cskip+Cres)       [wskip | wres]
    # bsr_ref:   (L, 1, Cskip+Cres)          [bskip | bres]
    # wp1/bp1, wp2/bp2: post-net 1x1 convs
    # o_ref:     (B*T, n_quantize)
    cres = x_ref.shape[1]
    cskip = wsr_ref.shape[2] - cres

    out = x_ref[...]                                     # residual stream, in VMEM
    h = h_ref[...]
    skip_sum = jnp.zeros((batch * seq, cskip), jnp.float32)

    for l, d in enumerate(dilations):                    # static unroll
        # Causal shift by d within each batch element (zeros for t < d),
        # built from VMEM-resident values (no padded HBM buffers).
        zpad = jnp.zeros((d, cres), jnp.float32)
        pieces = []
        for b in range(batch):                           # static, tiny batch
            pieces.append(zpad)
            pieces.append(out[b * seq: b * seq + (seq - d), :])
        prev = jnp.concatenate(pieces, axis=0)           # (B*T, Cres) == x[t-d]

        # Folded gate matmul: [x[t-d] | x[t] | h[t]] @ packed weights.
        xcat = jnp.concatenate([prev, out, h], axis=-1)  # (B*T, 2*Cres+n_aux)
        pre = jnp.dot(xcat, wgate_ref[l],
                      preferred_element_type=jnp.float32) + bgate_ref[l]
        z = jax.nn.sigmoid(pre[:, :cres]) * jnp.tanh(pre[:, cres:])

        # Folded skip/res 1x1 matmul: z @ [wskip | wres].
        sr = jnp.dot(z, wsr_ref[l],
                     preferred_element_type=jnp.float32) + bsr_ref[l]
        skip_sum = skip_sum + sr[:, :cskip]
        out = sr[:, cskip:] + out                        # residual add

    # Post-net: relu -> 1x1 -> relu -> 1x1
    y = jnp.maximum(skip_sum, 0.0)
    y = jnp.dot(y, wp1_ref[...], preferred_element_type=jnp.float32) + bp1_ref[...]
    y = jnp.maximum(y, 0.0)
    o_ref[...] = jnp.dot(y, wp2_ref[...],
                         preferred_element_type=jnp.float32) + bp2_ref[...]


# ----------------------------------------------------------------------------
# Weight packing (per-layer pairs folded, stacked over layers)
# ----------------------------------------------------------------------------
def _pack_params(params):
    wg, bg, wsr, bsr = [], [], [], []
    for lp in params["layers"]:
        # rows: [tap k=0 (x[t-d]) ; tap k=1 (x[t]) ; aux], cols: [sigmoid | tanh]
        w_s = jnp.concatenate([lp["wds"][0], lp["wds"][1], lp["was"]], axis=0)
        w_t = jnp.concatenate([lp["wdt"][0], lp["wdt"][1], lp["wat"]], axis=0)
        wg.append(jnp.concatenate([w_s, w_t], axis=1))                 # (2C+A, 2C)
        bg.append(jnp.concatenate([lp["bds"] + lp["bas"],
                                   lp["bdt"] + lp["bat"]], axis=1))    # (1, 2C)
        wsr.append(jnp.concatenate([lp["wskip"], lp["wres"]], axis=1))  # (C, Cs+C)
        bsr.append(jnp.concatenate([lp["bskip"], lp["bres"]], axis=1))  # (1, Cs+C)
    return jnp.stack(wg), jnp.stack(bg), jnp.stack(wsr), jnp.stack(bsr)


# ----------------------------------------------------------------------------
# Forward pass: embedding gather front-end (JAX) + one fused pallas_call
# ----------------------------------------------------------------------------
def wavenet_forward(params, x_ids, h):
    # x_ids: (B, T) int32 ; h: (B, n_aux, T) float32  -> (B, T, n_quantize)
    bsz, seq = x_ids.shape

    # Causal front-end conv on one-hot inputs == embedding gather:
    #   out[t] = W1[x[t]] + W0[x[t-1]] + b   (W0 term is zero at t=0).
    w_prev = params["causal_w"][0]                       # applies to x[t-1]
    w_cur = params["causal_w"][1]                        # applies to x[t]
    cur = jnp.take(w_cur, x_ids, axis=0)                 # (B, T, Cres)
    prv = jnp.take(w_prev, x_ids, axis=0)                # (B, T, Cres)
    prv = jnp.concatenate(
        [jnp.zeros((bsz, 1, N_RESCH), jnp.float32), prv[:, :-1, :]], axis=1)
    x0 = cur + prv + params["causal_b"][None]            # (B, T, Cres)

    h_btc = jnp.transpose(h, (0, 2, 1))                  # (B, T, n_aux)
    x0_flat = x0.reshape(bsz * seq, N_RESCH)             # fold batch into M
    h_flat = h_btc.reshape(bsz * seq, N_AUX)

    wgate, bgate, wsr, bsr = _pack_params(params)

    kern = functools.partial(_wavenet_fused_kernel,
                             batch=bsz, seq=seq, dilations=DILATIONS)
    vmem = pl.BlockSpec(memory_space=pltpu.MemorySpace.VMEM)
    logits_flat = pl.pallas_call(
        kern,
        out_shape=jax.ShapeDtypeStruct((bsz * seq, N_QUANTIZE), jnp.float32),
        in_specs=[vmem] * 10,
        out_specs=vmem,
    )(x0_flat, h_flat, wgate, bgate, wsr, bsr,
      params["post1_w"], params["post1_b"],
      params["post2_w"], params["post2_b"])

    return logits_flat.reshape(bsz, seq, N_QUANTIZE)


# ----------------------------------------------------------------------------
# Deterministic parameter init (synthetic; no checkpoint loading)
# ----------------------------------------------------------------------------
def init_params(key):
    def dense(key, cin, cout):
        return (jax.random.normal(key, (cin, cout), jnp.float32)
                * (1.0 / jnp.sqrt(cin)))

    def conv(key, k, cin, cout):
        return (jax.random.normal(key, (k, cin, cout), jnp.float32)
                * (1.0 / jnp.sqrt(k * cin)))

    def bias(key, c):
        return jax.random.normal(key, (1, c), jnp.float32) * 0.01

    keys = iter(jax.random.split(key, 8 + 12 * len(DILATIONS)))
    params = {
        "causal_w": conv(next(keys), KERNEL_SIZE, N_QUANTIZE, N_RESCH),
        "causal_b": bias(next(keys), N_RESCH),
        "post1_w": dense(next(keys), N_SKIPCH, N_SKIPCH),
        "post1_b": bias(next(keys), N_SKIPCH),
        "post2_w": dense(next(keys), N_SKIPCH, N_QUANTIZE),
        "post2_b": bias(next(keys), N_QUANTIZE),
        "layers": [],
    }
    for _ in DILATIONS:
        params["layers"].append({
            "wds": conv(next(keys), KERNEL_SIZE, N_RESCH, N_RESCH),
            "bds": bias(next(keys), N_RESCH),
            "wdt": conv(next(keys), KERNEL_SIZE, N_RESCH, N_RESCH),
            "bdt": bias(next(keys), N_RESCH),
            "was": dense(next(keys), N_AUX, N_RESCH),
            "bas": bias(next(keys), N_RESCH),
            "wat": dense(next(keys), N_AUX, N_RESCH),
            "bat": bias(next(keys), N_RESCH),
            "wskip": dense(next(keys), N_RESCH, N_SKIPCH),
            "bskip": bias(next(keys), N_SKIPCH),
            "wres": dense(next(keys), N_RESCH, N_RESCH),
            "bres": bias(next(keys), N_RESCH),
        })
    return params


# ----------------------------------------------------------------------------
# Pure-JAX reference (unfused, one-hot front-end, HIGHEST-precision matmuls)
# ----------------------------------------------------------------------------
def _ref_causal_conv(x, w, b, d):
    K = w.shape[0]
    pad = (K - 1) * d
    xpad = jnp.pad(x, ((0, 0), (pad, 0), (0, 0)))
    acc = 0.0
    for k in range(K):
        acc = acc + jnp.einsum("btc,cd->btd",
                               xpad[:, k * d:k * d + x.shape[1], :], w[k],
                               precision=_HI)
    return acc + b[None]


def wavenet_reference(params, x_ids, h):
    onehot = jax.nn.one_hot(x_ids, N_QUANTIZE, dtype=jnp.float32)
    h_btc = jnp.transpose(h, (0, 2, 1))
    out = _ref_causal_conv(onehot, params["causal_w"], params["causal_b"], d=1)
    skip_sum = 0.0
    for l, d in enumerate(DILATIONS):
        lp = params["layers"][l]
        s = _ref_causal_conv(out, lp["wds"], lp["bds"], d)
        t = _ref_causal_conv(out, lp["wdt"], lp["bdt"], d)
        s = s + jnp.einsum("btc,cd->btd", h_btc, lp["was"], precision=_HI) + lp["bas"][None]
        t = t + jnp.einsum("btc,cd->btd", h_btc, lp["wat"], precision=_HI) + lp["bat"][None]
        z = jax.nn.sigmoid(s) * jnp.tanh(t)
        skip = jnp.einsum("btc,cd->btd", z, lp["wskip"], precision=_HI) + lp["bskip"][None]
        out = jnp.einsum("btc,cd->btd", z, lp["wres"], precision=_HI) + lp["bres"][None] + out
        skip_sum = skip_sum + skip
    y = jnp.maximum(skip_sum, 0.0)
    y = jnp.einsum("btc,cd->btd", y, params["post1_w"], precision=_HI) + params["post1_b"][None]
    y = jnp.maximum(y, 0.0)
    y = jnp.einsum("btc,cd->btd", y, params["post2_w"], precision=_HI) + params["post2_b"][None]
    return y


if __name__ == "__main__":
    key = jax.random.PRNGKey(0)
    kp, kx, kh = jax.random.split(key, 3)

    params = init_params(kp)
    x_ids = jax.random.randint(kx, (B, T), 0, N_QUANTIZE, dtype=jnp.int32)
    h = jax.random.normal(kh, (B, N_AUX, T), jnp.float32)

    fwd = jax.jit(wavenet_forward)
    logits = fwd(params, x_ids, h)
    jax.block_until_ready(logits)

    assert logits.shape == (B, T, N_QUANTIZE), logits.shape

    ref = wavenet_reference(params, x_ids, h)
    err = float(jnp.max(jnp.abs(logits - ref)))
    assert err < 1e-4, f"max abs error vs reference: {err}"

    print("KERNEL_OK")
</pallas_src>

<mosaic_0001>
module attributes {stable_mosaic.version = 11 : i64} {
  func.func @_wavenet_fused_kernel(%arg0: memref<64x32xf32, #tpu.memory_space<vmem>>, %arg1: memref<64x16xf32, #tpu.memory_space<vmem>>, %arg2: memref<6x80x64xf32, #tpu.memory_space<vmem>>, %arg3: memref<6x1x64xf32, #tpu.memory_space<vmem>>, %arg4: memref<6x32x64xf32, #tpu.memory_space<vmem>>, %arg5: memref<6x1x64xf32, #tpu.memory_space<vmem>>, %arg6: memref<32x32xf32, #tpu.memory_space<vmem>>, %arg7: memref<1x32xf32, #tpu.memory_space<vmem>>, %arg8: memref<32x32xf32, #tpu.memory_space<vmem>>, %arg9: memref<1x32xf32, #tpu.memory_space<vmem>>, %arg10: memref<64x32xf32, #tpu.memory_space<vmem>>) attributes {dimension_semantics = [], scalar_prefetch = 0 : i64, scratch_operands = 0 : i64, tpu.core_type = #tpu.core_type<tc>} {
    %c0 = arith.constant 0 : index
    %c0_0 = arith.constant 0 : index
    %0 = vector.load %arg0[%c0, %c0_0] : memref<64x32xf32, #tpu.memory_space<vmem>>, vector<64x32xf32>
    %c0_1 = arith.constant 0 : index
    %c0_2 = arith.constant 0 : index
    %1 = vector.load %arg1[%c0_1, %c0_2] : memref<64x16xf32, #tpu.memory_space<vmem>>, vector<64x16xf32>
    %cst = arith.constant 0.000000e+00 : f32
    %2 = vector.broadcast %cst : f32 to vector<64x32xf32>
    %cst_3 = arith.constant 0.000000e+00 : f32
    %3 = vector.broadcast %cst_3 : f32 to vector<1x32xf32>
    %4 = vector.extract_strided_slice %0 {offsets = [0, 0], sizes = [31, 32], strides = [1, 1]} : vector<64x32xf32> to vector<31x32xf32>
    %5 = vector.extract_strided_slice %0 {offsets = [32, 0], sizes = [31, 32], strides = [1, 1]} : vector<64x32xf32> to vector<31x32xf32>
    %6 = tpu.concatenate %3, %4, %3, %5 in 0 : vector<1x32xf32>, vector<31x32xf32>, vector<1x32xf32>, vector<31x32xf32> -> vector<64x32xf32>
    %7 = tpu.concatenate %6, %0, %1 in 1 : vector<64x32xf32>, vector<64x32xf32>, vector<64x16xf32> -> vector<64x80xf32>
    %c0_4 = arith.constant 0 : index
    %c0_5 = arith.constant 0 : index
    %c0_6 = arith.constant 0 : index
    %8 = vector.load %arg2[%c0_4, %c0_5, %c0_6] : memref<6x80x64xf32, #tpu.memory_space<vmem>>, vector<1x80x64xf32>
    %9 = vector.shape_cast %8 : vector<1x80x64xf32> to vector<80x64xf32>
    %cst_7 = arith.constant dense<0.000000e+00> : vector<64x64xf32>
    %10 = tpu.matmul %7, %9, %cst_7 {dimension_numbers = #tpu.dot_dimension_numbers<[1], [0], [0], [1], [0, 0, 1, 1], [], []>} : vector<64x80xf32>, vector<80x64xf32>, vector<64x64xf32> -> vector<64x64xf32>
    %c0_8 = arith.constant 0 : index
    %c0_9 = arith.constant 0 : index
    %c0_10 = arith.constant 0 : index
    %11 = vector.load %arg3[%c0_8, %c0_9, %c0_10] : memref<6x1x64xf32, #tpu.memory_space<vmem>>, vector<1x1x64xf32>
    %12 = vector.shape_cast %11 : vector<1x1x64xf32> to vector<1x64xf32>
    %13 = vector.broadcast %12 : vector<1x64xf32> to vector<64x64xf32>
    %14 = arith.addf %10, %13 : vector<64x64xf32>
    %15 = vector.extract_strided_slice %14 {offsets = [0, 0], sizes = [64, 32], strides = [1, 1]} : vector<64x64xf32> to vector<64x32xf32>
    %16 = arith.negf %15 : vector<64x32xf32>
    %17 = math.exp %16 : vector<64x32xf32>
    %cst_11 = arith.constant 1.000000e+00 : f32
    %18 = vector.broadcast %cst_11 : f32 to vector<64x32xf32>
    %19 = arith.addf %18, %17 : vector<64x32xf32>
    %20 = arith.divf %18, %19 : vector<64x32xf32>
    %21 = vector.extract_strided_slice %14 {offsets = [0, 32], sizes = [64, 32], strides = [1, 1]} : vector<64x64xf32> to vector<64x32xf32>
    %22 = math.tanh %21 : vector<64x32xf32>
    %23 = arith.mulf %20, %22 : vector<64x32xf32>
    %c0_12 = arith.constant 0 : index
    %c0_13 = arith.constant 0 : index
    %c0_14 = arith.constant 0 : index
    %24 = vector.load %arg4[%c0_12, %c0_13, %c0_14] : memref<6x32x64xf32, #tpu.memory_space<vmem>>, vector<1x32x64xf32>
    %25 = vector.shape_cast %24 : vector<1x32x64xf32> to vector<32x64xf32>
    %cst_15 = arith.constant dense<0.000000e+00> : vector<64x64xf32>
    %26 = tpu.matmul %23, %25, %cst_15 {dimension_numbers = #tpu.dot_dimension_numbers<[1], [0], [0], [1], [0, 0, 1, 1], [], []>} : vector<64x32xf32>, vector<32x64xf32>, vector<64x64xf32> -> vector<64x64xf32>
    %c0_16 = arith.constant 0 : index
    %c0_17 = arith.constant 0 : index
    %c0_18 = arith.constant 0 : index
    %27 = vector.load %arg5[%c0_16, %c0_17, %c0_18] : memref<6x1x64xf32, #tpu.memory_space<vmem>>, vector<1x1x64xf32>
    %28 = vector.shape_cast %27 : vector<1x1x64xf32> to vector<1x64xf32>
    %29 = vector.broadcast %28 : vector<1x64xf32> to vector<64x64xf32>
    %30 = arith.addf %26, %29 : vector<64x64xf32>
    %31 = vector.extract_strided_slice %30 {offsets = [0, 0], sizes = [64, 32], strides = [1, 1]} : vector<64x64xf32> to vector<64x32xf32>
    %32 = arith.addf %2, %31 : vector<64x32xf32>
    %33 = vector.extract_strided_slice %30 {offsets = [0, 32], sizes = [64, 32], strides = [1, 1]} : vector<64x64xf32> to vector<64x32xf32>
    %34 = arith.addf %33, %0 : vector<64x32xf32>
    %cst_19 = arith.constant 0.000000e+00 : f32
    %35 = vector.broadcast %cst_19 : f32 to vector<2x32xf32>
    %36 = vector.extract_strided_slice %34 {offsets = [0, 0], sizes = [30, 32], strides = [1, 1]} : vector<64x32xf32> to vector<30x32xf32>
    %37 = vector.extract_strided_slice %34 {offsets = [32, 0], sizes = [30, 32], strides = [1, 1]} : vector<64x32xf32> to vector<30x32xf32>
    %38 = tpu.concatenate %35, %36, %35, %37 in 0 : vector<2x32xf32>, vector<30x32xf32>, vector<2x32xf32>, vector<30x32xf32> -> vector<64x32xf32>
    %39 = tpu.concatenate %38, %34, %1 in 1 : vector<64x32xf32>, vector<64x32xf32>, vector<64x16xf32> -> vector<64x80xf32>
    %c1 = arith.constant 1 : index
    %c0_20 = arith.constant 0 : index
    %c0_21 = arith.constant 0 : index
    %40 = vector.load %arg2[%c1, %c0_20, %c0_21] : memref<6x80x64xf32, #tpu.memory_space<vmem>>, vector<1x80x64xf32>
    %41 = vector.shape_cast %40 : vector<1x80x64xf32> to vector<80x64xf32>
    %cst_22 = arith.constant dense<0.000000e+00> : vector<64x64xf32>
    %42 = tpu.matmul %39, %41, %cst_22 {dimension_numbers = #tpu.dot_dimension_numbers<[1], [0], [0], [1], [0, 0, 1, 1], [], []>} : vector<64x80xf32>, vector<80x64xf32>, vector<64x64xf32> -> vector<64x64xf32>
    %c1_23 = arith.constant 1 : index
    %c0_24 = arith.constant 0 : index
    %c0_25 = arith.constant 0 : index
    %43 = vector.load %arg3[%c1_23, %c0_24, %c0_25] : memref<6x1x64xf32, #tpu.memory_space<vmem>>, vector<1x1x64xf32>
    %44 = vector.shape_cast %43 : vector<1x1x64xf32> to vector<1x64xf32>
    %45 = vector.broadcast %44 : vector<1x64xf32> to vector<64x64xf32>
    %46 = arith.addf %42, %45 : vector<64x64xf32>
    %47 = vector.extract_strided_slice %46 {offsets = [0, 0], sizes = [64, 32], strides = [1, 1]} : vector<64x64xf32> to vector<64x32xf32>
    %48 = arith.negf %47 : vector<64x32xf32>
    %49 = math.exp %48 : vector<64x32xf32>
    %cst_26 = arith.constant 1.000000e+00 : f32
    %50 = vector.broadcast %cst_26 : f32 to vector<64x32xf32>
    %51 = arith.addf %50, %49 : vector<64x32xf32>
    %52 = arith.divf %50, %51 : vector<64x32xf32>
    %53 = vector.extract_strided_slice %46 {offsets = [0, 32], sizes = [64, 32], strides = [1, 1]} : vector<64x64xf32> to vector<64x32xf32>
    %54 = math.tanh %53 : vector<64x32xf32>
    %55 = arith.mulf %52, %54 : vector<64x32xf32>
    %c1_27 = arith.constant 1 : index
    %c0_28 = arith.constant 0 : index
    %c0_29 = arith.constant 0 : index
    %56 = vector.load %arg4[%c1_27, %c0_28, %c0_29] : memref<6x32x64xf32, #tpu.memory_space<vmem>>, vector<1x32x64xf32>
    %57 = vector.shape_cast %56 : vector<1x32x64xf32> to vector<32x64xf32>
    %cst_30 = arith.constant dense<0.000000e+00> : vector<64x64xf32>
    %58 = tpu.matmul %55, %57, %cst_30 {dimension_numbers = #tpu.dot_dimension_numbers<[1], [0], [0], [1], [0, 0, 1, 1], [], []>} : vector<64x32xf32>, vector<32x64xf32>, vector<64x64xf32> -> vector<64x64xf32>
    %c1_31 = arith.constant 1 : index
    %c0_32 = arith.constant 0 : index
    %c0_33 = arith.constant 0 : index
    %59 = vector.load %arg5[%c1_31, %c0_32, %c0_33] : memref<6x1x64xf32, #tpu.memory_space<vmem>>, vector<1x1x64xf32>
    %60 = vector.shape_cast %59 : vector<1x1x64xf32> to vector<1x64xf32>
    %61 = vector.broadcast %60 : vector<1x64xf32> to vector<64x64xf32>
    %62 = arith.addf %58, %61 : vector<64x64xf32>
    %63 = vector.extract_strided_slice %62 {offsets = [0, 0], sizes = [64, 32], strides = [1, 1]} : vector<64x64xf32> to vector<64x32xf32>
    %64 = arith.addf %32, %63 : vector<64x32xf32>
    %65 = vector.extract_strided_slice %62 {offsets = [0, 32], sizes = [64, 32], strides = [1, 1]} : vector<64x64xf32> to vector<64x32xf32>
    %66 = arith.addf %65, %34 : vector<64x32xf32>
    %cst_34 = arith.constant 0.000000e+00 : f32
    %67 = vector.broadcast %cst_34 : f32 to vector<4x32xf32>
    %68 = vector.extract_strided_slice %66 {offsets = [0, 0], sizes = [28, 32], strides = [1, 1]} : vector<64x32xf32> to vector<28x32xf32>
    %69 = vector.extract_strided_slice %66 {offsets = [32, 0], sizes = [28, 32], strides = [1, 1]} : vector<64x32xf32> to vector<28x32xf32>
    %70 = tpu.concatenate %67, %68, %67, %69 in 0 : vector<4x32xf32>, vector<28x32xf32>, vector<4x32xf32>, vector<28x32xf32> -> vector<64x32xf32>
    %71 = tpu.concatenate %70, %66, %1 in 1 : vector<64x32xf32>, vector<64x32xf32>, vector<64x16xf32> -> vector<64x80xf32>
    %c2 = arith.constant 2 : index
    %c0_35 = arith.constant 0 : index
    %c0_36 = arith.constant 0 : index
    %72 = vector.load %arg2[%c2, %c0_35, %c0_36] : memref<6x80x64xf32, #tpu.memory_space<vmem>>, vector<1x80x64xf32>
    %73 = vector.shape_cast %72 : vector<1x80x64xf32> to vector<80x64xf32>
    %cst_37 = arith.constant dense<0.000000e+00> : vector<64x64xf32>
    %74 = tpu.matmul %71, %73, %cst_37 {dimension_numbers = #tpu.dot_dimension_numbers<[1], [0], [0], [1], [0, 0, 1, 1], [], []>} : vector<64x80xf32>, vector<80x64xf32>, vector<64x64xf32> -> vector<64x64xf32>
    %c2_38 = arith.constant 2 : index
    %c0_39 = arith.constant 0 : index
    %c0_40 = arith.constant 0 : index
    %75 = vector.load %arg3[%c2_38, %c0_39, %c0_40] : memref<6x1x64xf32, #tpu.memory_space<vmem>>, vector<1x1x64xf32>
    %76 = vector.shape_cast %75 : vector<1x1x64xf32> to vector<1x64xf32>
    %77 = vector.broadcast %76 : vector<1x64xf32> to vector<64x64xf32>
    %78 = arith.addf %74, %77 : vector<64x64xf32>
    %79 = vector.extract_strided_slice %78 {offsets = [0, 0], sizes = [64, 32], strides = [1, 1]} : vector<64x64xf32> to vector<64x32xf32>
    %80 = arith.negf %79 : vector<64x32xf32>
    %81 = math.exp %80 : vector<64x32xf32>
    %cst_41 = arith.constant 1.000000e+00 : f32
    %82 = vector.broadcast %cst_41 : f32 to vector<64x32xf32>
    %83 = arith.addf %82, %81 : vector<64x32xf32>
    %84 = arith.divf %82, %83 : vector<64x32xf32>
    %85 = vector.extract_strided_slice %78 {offsets = [0, 32], sizes = [64, 32], strides = [1, 1]} : vector<64x64xf32> to vector<64x32xf32>
    %86 = math.tanh %85 : vector<64x32xf32>
    %87 = arith.mulf %84, %86 : vector<64x32xf32>
    %c2_42 = arith.constant 2 : index
    %c0_43 = arith.constant 0 : index
    %c0_44 = arith.constant 0 : index
    %88 = vector.load %arg4[%c2_42, %c0_43, %c0_44] : memref<6x32x64xf32, #tpu.memory_space<vmem>>, vector<1x32x64xf32>
    %89 = vector.shape_cast %88 : vector<1x32x64xf32> to vector<32x64xf32>
    %cst_45 = arith.constant dense<0.000000e+00> : vector<64x64xf32>
    %90 = tpu.matmul %87, %89, %cst_45 {dimension_numbers = #tpu.dot_dimension_numbers<[1], [0], [0], [1], [0, 0, 1, 1], [], []>} : vector<64x32xf32>, vector<32x64xf32>, vector<64x64xf32> -> vector<64x64xf32>
    %c2_46 = arith.constant 2 : index
    %c0_47 = arith.constant 0 : index
    %c0_48 = arith.constant 0 : index
    %91 = vector.load %arg5[%c2_46, %c0_47, %c0_48] : memref<6x1x64xf32, #tpu.memory_space<vmem>>, vector<1x1x64xf32>
    %92 = vector.shape_cast %91 : vector<1x1x64xf32> to vector<1x64xf32>
    %93 = vector.broadcast %92 : vector<1x64xf32> to vector<64x64xf32>
    %94 = arith.addf %90, %93 : vector<64x64xf32>
    %95 = vector.extract_strided_slice %94 {offsets = [0, 0], sizes = [64, 32], strides = [1, 1]} : vector<64x64xf32> to vector<64x32xf32>
    %96 = arith.addf %64, %95 : vector<64x32xf32>
    %97 = vector.extract_strided_slice %94 {offsets = [0, 32], sizes = [64, 32], strides = [1, 1]} : vector<64x64xf32> to vector<64x32xf32>
    %98 = arith.addf %97, %66 : vector<64x32xf32>
    %cst_49 = arith.constant 0.000000e+00 : f32
    %99 = vector.broadcast %cst_49 : f32 to vector<1x32xf32>
    %100 = vector.extract_strided_slice %98 {offsets = [0, 0], sizes = [31, 32], strides = [1, 1]} : vector<64x32xf32> to vector<31x32xf32>
    %101 = vector.extract_strided_slice %98 {offsets = [32, 0], sizes = [31, 32], strides = [1, 1]} : vector<64x32xf32> to vector<31x32xf32>
    %102 = tpu.concatenate %99, %100, %99, %101 in 0 : vector<1x32xf32>, vector<31x32xf32>, vector<1x32xf32>, vector<31x32xf32> -> vector<64x32xf32>
    %103 = tpu.concatenate %102, %98, %1 in 1 : vector<64x32xf32>, vector<64x32xf32>, vector<64x16xf32> -> vector<64x80xf32>
    %c3 = arith.constant 3 : index
    %c0_50 = arith.constant 0 : index
    %c0_51 = arith.constant 0 : index
    %104 = vector.load %arg2[%c3, %c0_50, %c0_51] : memref<6x80x64xf32, #tpu.memory_space<vmem>>, vector<1x80x64xf32>
    %105 = vector.shape_cast %104 : vector<1x80x64xf32> to vector<80x64xf32>
    %cst_52 = arith.constant dense<0.000000e+00> : vector<64x64xf32>
    %106 = tpu.matmul %103, %105, %cst_52 {dimension_numbers = #tpu.dot_dimension_numbers<[1], [0], [0], [1], [0, 0, 1, 1], [], []>} : vector<64x80xf32>, vector<80x64xf32>, vector<64x64xf32> -> vector<64x64xf32>
    %c3_53 = arith.constant 3 : index
    %c0_54 = arith.constant 0 : index
    %c0_55 = arith.constant 0 : index
    %107 = vector.load %arg3[%c3_53, %c0_54, %c0_55] : memref<6x1x64xf32, #tpu.memory_space<vmem>>, vector<1x1x64xf32>
    %108 = vector.shape_cast %107 : vector<1x1x64xf32> to vector<1x64xf32>
    %109 = vector.broadcast %108 : vector<1x64xf32> to vector<64x64xf32>
    %110 = arith.addf %106, %109 : vector<64x64xf32>
    %111 = vector.extract_strided_slice %110 {offsets = [0, 0], sizes = [64, 32], strides = [1, 1]} : vector<64x64xf32> to vector<64x32xf32>
    %112 = arith.negf %111 : vector<64x32xf32>
    %113 = math.exp %112 : vector<64x32xf32>
    %cst_56 = arith.constant 1.000000e+00 : f32
    %114 = vector.broadcast %cst_56 : f32 to vector<64x32xf32>
    %115 = arith.addf %114, %113 : vector<64x32xf32>
    %116 = arith.divf %114, %115 : vector<64x32xf32>
    %117 = vector.extract_strided_slice %110 {offsets = [0, 32], sizes = [64, 32], strides = [1, 1]} : vector<64x64xf32> to vector<64x32xf32>
    %118 = math.tanh %117 : vector<64x32xf32>
    %119 = arith.mulf %116, %118 : vector<64x32xf32>
    %c3_57 = arith.constant 3 : index
    %c0_58 = arith.constant 0 : index
    %c0_59 = arith.constant 0 : index
    %120 = vector.load %arg4[%c3_57, %c0_58, %c0_59] : memref<6x32x64xf32, #tpu.memory_space<vmem>>, vector<1x32x64xf32>
    %121 = vector.shape_cast %120 : vector<1x32x64xf32> to vector<32x64xf32>
    %cst_60 = arith.constant dense<0.000000e+00> : vector<64x64xf32>
    %122 = tpu.matmul %119, %121, %cst_60 {dimension_numbers = #tpu.dot_dimension_numbers<[1], [0], [0], [1], [0, 0, 1, 1], [], []>} : vector<64x32xf32>, vector<32x64xf32>, vector<64x64xf32> -> vector<64x64xf32>
    %c3_61 = arith.constant 3 : index
    %c0_62 = arith.constant 0 : index
    %c0_63 = arith.constant 0 : index
    %123 = vector.load %arg5[%c3_61, %c0_62, %c0_63] : memref<6x1x64xf32, #tpu.memory_space<vmem>>, vector<1x1x64xf32>
    %124 = vector.shape_cast %123 : vector<1x1x64xf32> to vector<1x64xf32>
    %125 = vector.broadcast %124 : vector<1x64xf32> to vector<64x64xf32>
    %126 = arith.addf %122, %125 : vector<64x64xf32>
    %127 = vector.extract_strided_slice %126 {offsets = [0, 0], sizes = [64, 32], strides = [1, 1]} : vector<64x64xf32> to vector<64x32xf32>
    %128 = arith.addf %96, %127 : vector<64x32xf32>
    %129 = vector.extract_strided_slice %126 {offsets = [0, 32], sizes = [64, 32], strides = [1, 1]} : vector<64x64xf32> to vector<64x32xf32>
    %130 = arith.addf %129, %98 : vector<64x32xf32>
    %cst_64 = arith.constant 0.000000e+00 : f32
    %131 = vector.broadcast %cst_64 : f32 to vector<2x32xf32>
    %132 = vector.extract_strided_slice %130 {offsets = [0, 0], sizes = [30, 32], strides = [1, 1]} : vector<64x32xf32> to vector<30x32xf32>
    %133 = vector.extract_strided_slice %130 {offsets = [32, 0], sizes = [30, 32], strides = [1, 1]} : vector<64x32xf32> to vector<30x32xf32>
    %134 = tpu.concatenate %131, %132, %131, %133 in 0 : vector<2x32xf32>, vector<30x32xf32>, vector<2x32xf32>, vector<30x32xf32> -> vector<64x32xf32>
    %135 = tpu.concatenate %134, %130, %1 in 1 : vector<64x32xf32>, vector<64x32xf32>, vector<64x16xf32> -> vector<64x80xf32>
    %c4 = arith.constant 4 : index
    %c0_65 = arith.constant 0 : index
    %c0_66 = arith.constant 0 : index
    %136 = vector.load %arg2[%c4, %c0_65, %c0_66] : memref<6x80x64xf32, #tpu.memory_space<vmem>>, vector<1x80x64xf32>
    %137 = vector.shape_cast %136 : vector<1x80x64xf32> to vector<80x64xf32>
    %cst_67 = arith.constant dense<0.000000e+00> : vector<64x64xf32>
    %138 = tpu.matmul %135, %137, %cst_67 {dimension_numbers = #tpu.dot_dimension_numbers<[1], [0], [0], [1], [0, 0, 1, 1], [], []>} : vector<64x80xf32>, vector<80x64xf32>, vector<64x64xf32> -> vector<64x64xf32>
    %c4_68 = arith.constant 4 : index
    %c0_69 = arith.constant 0 : index
    %c0_70 = arith.constant 0 : index
    %139 = vector.load %arg3[%c4_68, %c0_69, %c0_70] : memref<6x1x64xf32, #tpu.memory_space<vmem>>, vector<1x1x64xf32>
    %140 = vector.shape_cast %139 : vector<1x1x64xf32> to vector<1x64xf32>
    %141 = vector.broadcast %140 : vector<1x64xf32> to vector<64x64xf32>
    %142 = arith.addf %138, %141 : vector<64x64xf32>
    %143 = vector.extract_strided_slice %142 {offsets = [0, 0], sizes = [64, 32], strides = [1, 1]} : vector<64x64xf32> to vector<64x32xf32>
    %144 = arith.negf %143 : vector<64x32xf32>
    %145 = math.exp %144 : vector<64x32xf32>
    %cst_71 = arith.constant 1.000000e+00 : f32
    %146 = vector.broadcast %cst_71 : f32 to vector<64x32xf32>
    %147 = arith.addf %146, %145 : vector<64x32xf32>
    %148 = arith.divf %146, %147 : vector<64x32xf32>
    %149 = vector.extract_strided_slice %142 {offsets = [0, 32], sizes = [64, 32], strides = [1, 1]} : vector<64x64xf32> to vector<64x32xf32>
    %150 = math.tanh %149 : vector<64x32xf32>
    %151 = arith.mulf %148, %150 : vector<64x32xf32>
    %c4_72 = arith.constant 4 : index
    %c0_73 = arith.constant 0 : index
    %c0_74 = arith.constant 0 : index
    %152 = vector.load %arg4[%c4_72, %c0_73, %c0_74] : memref<6x32x64xf32, #tpu.memory_space<vmem>>, vector<1x32x64xf32>
    %153 = vector.shape_cast %152 : vector<1x32x64xf32> to vector<32x64xf32>
    %cst_75 = arith.constant dense<0.000000e+00> : vector<64x64xf32>
    %154 = tpu.matmul %151, %153, %cst_75 {dimension_numbers = #tpu.dot_dimension_numbers<[1], [0], [0], [1], [0, 0, 1, 1], [], []>} : vector<64x32xf32>, vector<32x64xf32>, vector<64x64xf32> -> vector<64x64xf32>
    %c4_76 = arith.constant 4 : index
    %c0_77 = arith.constant 0 : index
    %c0_78 = arith.constant 0 : index
    %155 = vector.load %arg5[%c4_76, %c0_77, %c0_78] : memref<6x1x64xf32, #tpu.memory_space<vmem>>, vector<1x1x64xf32>
    %156 = vector.shape_cast %155 : vector<1x1x64xf32> to vector<1x64xf32>
    %157 = vector.broadcast %156 : vector<1x64xf32> to vector<64x64xf32>
    %158 = arith.addf %154, %157 : vector<64x64xf32>
    %159 = vector.extract_strided_slice %158 {offsets = [0, 0], sizes = [64, 32], strides = [1, 1]} : vector<64x64xf32> to vector<64x32xf32>
    %160 = arith.addf %128, %159 : vector<64x32xf32>
    %161 = vector.extract_strided_slice %158 {offsets = [0, 32], sizes = [64, 32], strides = [1, 1]} : vector<64x64xf32> to vector<64x32xf32>
    %162 = arith.addf %161, %130 : vector<64x32xf32>
    %cst_79 = arith.constant 0.000000e+00 : f32
    %163 = vector.broadcast %cst_79 : f32 to vector<4x32xf32>
    %164 = vector.extract_strided_slice %162 {offsets = [0, 0], sizes = [28, 32], strides = [1, 1]} : vector<64x32xf32> to vector<28x32xf32>
    %165 = vector.extract_strided_slice %162 {offsets = [32, 0], sizes = [28, 32], strides = [1, 1]} : vector<64x32xf32> to vector<28x32xf32>
    %166 = tpu.concatenate %163, %164, %163, %165 in 0 : vector<4x32xf32>, vector<28x32xf32>, vector<4x32xf32>, vector<28x32xf32> -> vector<64x32xf32>
    %167 = tpu.concatenate %166, %162, %1 in 1 : vector<64x32xf32>, vector<64x32xf32>, vector<64x16xf32> -> vector<64x80xf32>
    %c5 = arith.constant 5 : index
    %c0_80 = arith.constant 0 : index
    %c0_81 = arith.constant 0 : index
    %168 = vector.load %arg2[%c5, %c0_80, %c0_81] : memref<6x80x64xf32, #tpu.memory_space<vmem>>, vector<1x80x64xf32>
    %169 = vector.shape_cast %168 : vector<1x80x64xf32> to vector<80x64xf32>
    %cst_82 = arith.constant dense<0.000000e+00> : vector<64x64xf32>
    %170 = tpu.matmul %167, %169, %cst_82 {dimension_numbers = #tpu.dot_dimension_numbers<[1], [0], [0], [1], [0, 0, 1, 1], [], []>} : vector<64x80xf32>, vector<80x64xf32>, vector<64x64xf32> -> vector<64x64xf32>
    %c5_83 = arith.constant 5 : index
    %c0_84 = arith.constant 0 : index
    %c0_85 = arith.constant 0 : index
    %171 = vector.load %arg3[%c5_83, %c0_84, %c0_85] : memref<6x1x64xf32, #tpu.memory_space<vmem>>, vector<1x1x64xf32>
    %172 = vector.shape_cast %171 : vector<1x1x64xf32> to vector<1x64xf32>
    %173 = vector.broadcast %172 : vector<1x64xf32> to vector<64x64xf32>
    %174 = arith.addf %170, %173 : vector<64x64xf32>
    %175 = vector.extract_strided_slice %174 {offsets = [0, 0], sizes = [64, 32], strides = [1, 1]} : vector<64x64xf32> to vector<64x32xf32>
    %176 = arith.negf %175 : vector<64x32xf32>
    %177 = math.exp %176 : vector<64x32xf32>
    %cst_86 = arith.constant 1.000000e+00 : f32
    %178 = vector.broadcast %cst_86 : f32 to vector<64x32xf32>
    %179 = arith.addf %178, %177 : vector<64x32xf32>
    %180 = arith.divf %178, %179 : vector<64x32xf32>
    %181 = vector.extract_strided_slice %174 {offsets = [0, 32], sizes = [64, 32], strides = [1, 1]} : vector<64x64xf32> to vector<64x32xf32>
    %182 = math.tanh %181 : vector<64x32xf32>
    %183 = arith.mulf %180, %182 : vector<64x32xf32>
    %c5_87 = arith.constant 5 : index
    %c0_88 = arith.constant 0 : index
    %c0_89 = arith.constant 0 : index
    %184 = vector.load %arg4[%c5_87, %c0_88, %c0_89] : memref<6x32x64xf32, #tpu.memory_space<vmem>>, vector<1x32x64xf32>
    %185 = vector.shape_cast %184 : vector<1x32x64xf32> to vector<32x64xf32>
    %cst_90 = arith.constant dense<0.000000e+00> : vector<64x64xf32>
    %186 = tpu.matmul %183, %185, %cst_90 {dimension_numbers = #tpu.dot_dimension_numbers<[1], [0], [0], [1], [0, 0, 1, 1], [], []>} : vector<64x32xf32>, vector<32x64xf32>, vector<64x64xf32> -> vector<64x64xf32>
    %c5_91 = arith.constant 5 : index
    %c0_92 = arith.constant 0 : index
    %c0_93 = arith.constant 0 : index
    %187 = vector.load %arg5[%c5_91, %c0_92, %c0_93] : memref<6x1x64xf32, #tpu.memory_space<vmem>>, vector<1x1x64xf32>
    %188 = vector.shape_cast %187 : vector<1x1x64xf32> to vector<1x64xf32>
    %189 = vector.broadcast %188 : vector<1x64xf32> to vector<64x64xf32>
    %190 = arith.addf %186, %189 : vector<64x64xf32>
    %191 = vector.extract_strided_slice %190 {offsets = [0, 0], sizes = [64, 32], strides = [1, 1]} : vector<64x64xf32> to vector<64x32xf32>
    %192 = arith.addf %160, %191 : vector<64x32xf32>
    %cst_94 = arith.constant 0.000000e+00 : f32
    %193 = vector.broadcast %cst_94 : f32 to vector<64x32xf32>
    %194 = arith.maximumf %192, %193 : vector<64x32xf32>
    %c0_95 = arith.constant 0 : index
    %c0_96 = arith.constant 0 : index
    %195 = vector.load %arg6[%c0_95, %c0_96] : memref<32x32xf32, #tpu.memory_space<vmem>>, vector<32x32xf32>
    %cst_97 = arith.constant dense<0.000000e+00> : vector<64x32xf32>
    %196 = tpu.matmul %194, %195, %cst_97 {dimension_numbers = #tpu.dot_dimension_numbers<[1], [0], [0], [1], [0, 0, 1, 1], [], []>} : vector<64x32xf32>, vector<32x32xf32>, vector<64x32xf32> -> vector<64x32xf32>
    %c0_98 = arith.constant 0 : index
    %c0_99 = arith.constant 0 : index
    %197 = vector.load %arg7[%c0_98, %c0_99] : memref<1x32xf32, #tpu.memory_space<vmem>>, vector<1x32xf32>
    %198 = vector.broadcast %197 : vector<1x32xf32> to vector<64x32xf32>
    %199 = arith.addf %196, %198 : vector<64x32xf32>
    %cst_100 = arith.constant 0.000000e+00 : f32
    %200 = vector.broadcast %cst_100 : f32 to vector<64x32xf32>
    %201 = arith.maximumf %199, %200 : vector<64x32xf32>
    %c0_101 = arith.constant 0 : index
    %c0_102 = arith.constant 0 : index
    %202 = vector.load %arg8[%c0_101, %c0_102] : memref<32x32xf32, #tpu.memory_space<vmem>>, vector<32x32xf32>
    %cst_103 = arith.constant dense<0.000000e+00> : vector<64x32xf32>
    %203 = tpu.matmul %201, %202, %cst_103 {dimension_numbers = #tpu.dot_dimension_numbers<[1], [0], [0], [1], [0, 0, 1, 1], [], []>} : vector<64x32xf32>, vector<32x32xf32>, vector<64x32xf32> -> vector<64x32xf32>
    %c0_104 = arith.constant 0 : index
    %c0_105 = arith.constant 0 : index
    %204 = vector.load %arg9[%c0_104, %c0_105] : memref<1x32xf32, #tpu.memory_space<vmem>>, vector<1x32xf32>
    %205 = vector.broadcast %204 : vector<1x32xf32> to vector<64x32xf32>
    %206 = arith.addf %203, %205 : vector<64x32xf32>
    %c0_106 = arith.constant 0 : index
    %c0_107 = arith.constant 0 : index
    %207 = vector.load %arg10[%c0_106, %c0_107] : memref<64x32xf32, #tpu.memory_space<vmem>>, vector<64x32xf32>
    tpu.vector_store %arg10[%c0_106, %c0_107], %206 {strides = array<i32>} : memref<64x32xf32, #tpu.memory_space<vmem>>, vector<64x32xf32>,
    return
  }
}

</mosaic_0001>

<bundles_post_ra>
// kernel: wavenet_forward.1
= control target key start
LH: loop header
LB: loop body
LE: loop exit
PB: predicated region body
PF: predicated region fallthrough
CT: control target
= control target key end

     0   :  { %s4514_s17 = smov 64   ;;  %s4515_s18 = smov 32   ;;  %vm56_vm0 = vcmask 1040384   ;;  %s5747_s0 = inlined_call_operand.vmem [shape: f32[64,32], index: 0, kind: input, shape index: {}]   ;;  %s5748_s1 = inlined_call_operand.vmem [shape: f32[64,16], index: 1, kind: input, shape index: {}]   ;;  %s5749_s2 = inlined_call_operand.vmem [shape: f32[6,80,64], index: 2, kind: input, shape index: {}]   ;;  %s5750_s3 = inlined_call_operand.vmem [shape: f32[6,1,64], index: 3, kind: input, shape index: {}]   ;;  %s5751_s4 = inlined_call_operand.vmem [shape: f32[6,32,64], index: 4, kind: input, shape index: {}]   ;;  %s5752_s5 = inlined_call_operand.vmem [shape: f32[6,1,64], index: 5, kind: input, shape index: {}]   ;;  %s5753_s6 = inlined_call_operand.vmem [shape: f32[32,32], index: 6, kind: input, shape index: {}]   ;;  %s5754_s7 = inlined_call_operand.vmem [shape: f32[1,32], index: 7, kind: input, shape index: {}]   ;;  %s5755_s8 = inlined_call_operand.vmem [shape: f32[32,32], index: 8, kind: input, shape index: {}]   ;;  %s5756_s9 = inlined_call_operand.vmem [shape: f32[1,32], index: 9, kind: input, shape index: {}]   ;;  %s5757_s10 = inlined_call_operand.hbm [shape: f32[64,32], index: 10, kind: output, shape index: {}]  }
   0x1   :  { %v44_v0 = vld [vmem:[%s5748_s1] sm:$0xff]  ;;  %v37_v2 = vld [vmem:[%s5747_s0 + $0x8] sm:$0xff]  ;;  %v39_v3 = vld [vmem:[%s5747_s0 + $0x18] sm:$0xff] }
   0x2   :  { %v4581_v1 = vld [vmem:[%s5747_s0] sm:$0xff]  ;;  %117 = vrot.lane.b32.xlu1 %v44_v0, %s4514_s17  ;;  %v45_v5 = vld [vmem:[%s5748_s1 + $0x8] sm:$0xff]  ;;  %v58_v6 = vrot.slane %v37_v2, 7  ;;  %v62_v7 = vrot.slane %v39_v3, 7  ;;  %v38_v8 = vld [vmem:[%s5747_s0 + $0x10] sm:$0xff] }
   0x3   :  { %85 = vrot.lane.b32.xlu0 %v4581_v1, %s4515_s18  ;;  %v57_v4 = vrot.slane %v4581_v1, 7  ;;  %v60_v9 = vrot.slane %v38_v8, 7  ;;  %v41_v10 = vld [vmem:[%s5747_s0 + $0x28] sm:$0xff]  ;;  %v4605_v11 = vld [vmem:[%s5747_s0 + $0x20] sm:$0xff]  ;;  %v43_v15 = vld [vmem:[%s5747_s0 + $0x38] sm:$0xff] }
   0x4   :  { %v73_v12 = vrot.slane %v41_v10, 7  ;;  %v72_v13 = vrot.slane %v4605_v11, 7  ;;  %v42_v16 = vld [vmem:[%s5747_s0 + $0x30] sm:$0xff]  ;;  %v77_v19 = vrot.slane %v43_v15, 7  ;;  %v159_v21 = vld [vmem:[%s5749_s2] sm:$0xff]  ;;  %v160_v22 = vld [vmem:[%s5749_s2 + $0x8] sm:$0xff] }
   0x5   :  { %v4611_v14 = vsel %vm56_vm0, %v57_v4, %v58_v6  ;;  %v4622_v17 = vsel %vm56_vm0, %v60_v9, %v62_v7  ;;  %v4625_v18 = vsel %vm56_vm0, %v58_v6, %v60_v9  ;;  %v75_v20 = vrot.slane %v42_v16, 7  ;;  %v161_v23 = vld [vmem:[%s5749_s2 + $0x10] sm:$0xff]  ;;  %v162_v26 = vld [vmem:[%s5749_s2 + $0x18] sm:$0xff]  ;;  %v163_v28 = vld [vmem:[%s5749_s2 + $0x20] sm:$0xff] }
   0x6   :  { %119 = vrot.lane.b32.xlu1 %v45_v5, %s4514_s17  ;;  %v4639_v24 = vsel %vm56_vm0, %v72_v13, %v73_v12  ;;  %v4012_v25 = vpack.c.bf16 %v160_v22, %v159_v21  ;;  %v4016_v27 = vpack.c.bf16 %v162_v26, %v161_v23  ;;  %v164_v29 = vld [vmem:[%s5749_s2 + $0x28] sm:$0xff] }
   0x7   :  { %87 = vrot.lane.b32.xlu0 %v37_v2, %s4515_s18 }
   0xa   :  { %91 = vrot.lane.b32.xlu1 %v39_v3, %s4515_s18 }
   0xb   :  { %89 = vrot.lane.b32.xlu0 %v38_v8, %s4515_s18 }
   0xc   :  { %15 = vsyncpa [#allocation3], 0  ;;  %v47_v30 = vld [vmem:[%s5748_s1 + $0x18] sm:$0xff]  ;;  %v46_v31 = vld [vmem:[%s5748_s1 + $0x10] sm:$0xff]  ;;  %4013 = vmatprep.subr.bf16.mxu0 %v4012_v25  ;;  %v4659_v32 = vsel %vm56_vm0, %v75_v20, %v77_v19  ;;  %v4662_v33 = vsel %vm56_vm0, %v73_v12, %v75_v20  ;;  %v4020_v34 = vpack.c.bf16 %v164_v29, %v163_v28  ;;  %v83_v45 = vsel %vm56_vm0, 0.0, %v57_v4  ;;  %s4516_s16 = smov 96  }
   0xd   :  { %4015 = vmatpush3.bf16.msra.mxu0 %v4012_v25  ;;  %v165_v35 = vld [vmem:[%s5749_s2 + $0x30] sm:$0xff]  ;;  %v166_v36 = vld [vmem:[%s5749_s2 + $0x38] sm:$0xff]  ;;  %v167_v38 = vld [vmem:[%s5749_s2 + $0x40] sm:$0xff]  ;;  %vm141_vm1 = vcmask 261120   ;;  %vm150_vm2 = vcmask 523264   ;;  %vm176_vm3 = vcmask 654336  }
   0xe   :  { %4017 = vmatprep.subr.bf16.mxu0 %v4016_v27  ;;  %123 = vrot.lane.b32.xlu1 %v47_v30, %s4514_s17  ;;  %v4024_v37 = vpack.c.bf16 %v166_v36, %v165_v35  ;;  %v168_v39 = vld [vmem:[%s5749_s2 + $0x48] sm:$0xff]  ;;  %v48_v41 = vld [vmem:[%s5748_s1 + $0x20] sm:$0xff]  ;;  %v51_v43 = vld [vmem:[%s5748_s1 + $0x38] sm:$0xff]  ;;  %v84_v0 = vsel %vm56_vm0, 0.0, %v72_v13  ;;  %vm562_vm4 = vcmask 1041408   ;;  %vm1029_vm5 = vcmask 1043456  }
   0xf   :  { %121 = vrot.lane.b32.xlu0 %v46_v31, %s4514_s17  ;;  %v49_v40 = vld [vmem:[%s5748_s1 + $0x28] sm:$0xff]  ;;  %v4028_v42 = vpack.c.bf16 %v168_v39, %v167_v38  ;;  %v50_v44 = vld [vmem:[%s5748_s1 + $0x30] sm:$0xff]  ;;  %v405_v23 = vld [vmem:[%s5751_s4 + $0x18] sm:$0xff] }
  0x10   :  { %v404_v22 = vld [vmem:[%s5751_s4 + $0x10] sm:$0xff] }
  0x11   :  { %4019 = vmatpush3.bf16.msra.mxu0 %v4016_v27  ;;  %v4036_v25 = vpack.c.bf16 %v405_v23, %v404_v22 }
  0x12   :  { %4021 = vmatprep.subr.bf16.mxu0 %v4020_v34  ;;  %95 = vrot.lane.b32.xlu1 %v41_v10, %s4515_s18 }
  0x13   :  { %93 = vrot.lane.b32.xlu0 %v4605_v11, %s4515_s18 }
  0x15   :  { %4023 = vmatpush3.bf16.msra.mxu0 %v4020_v34 }
  0x16   :  { %4025 = vmatprep.subr.bf16.mxu0 %v4024_v37  ;;  %127 = vrot.lane.b32.xlu1 %v49_v40, %s4514_s17 }
  0x17   :  { %125 = vrot.lane.b32.xlu0 %v48_v41, %s4514_s17 }
  0x19   :  { %4027 = vmatpush3.bf16.msra.mxu0 %v4024_v37 }
  0x1a   :  { %4029 = vmatprep.subr.bf16.mxu0 %v4028_v42  ;;  %99 = vrot.lane.b32.xlu1 %v43_v15, %s4515_s18  ;;  %v402_v15 = vld [vmem:[%s5751_s4] sm:$0xff] }
  0x1b   :  { %97 = vrot.lane.b32.xlu0 %v42_v16, %s4515_s18  ;;  %v403_v16 = vld [vmem:[%s5751_s4 + $0x8] sm:$0xff] }
  0x1d   :  { %4031 = vmatpush3.bf16.msra.mxu0 %v4028_v42 }
  0x1e   :  { %131 = vrot.lane.b32.xlu1 %v51_v43, %s4514_s17 }
  0x1f   :  { %129 = vrot.lane.b32.xlu0 %v50_v44, %s4514_s17 }
  0x74   :  { %v4702_v46 = vpop.permute.xlu1 %117 }
  0x75   :  { %v4704_v47 = vpop.permute.xlu0 %85 }
  0x76   :  { %v142_v48 = vsel %vm141_vm1, %v83_v45, %v4704_v47 }
  0x77   :  { %v151_v49 = vsel %vm150_vm2, %v142_v48, %v4702_v46 }
  0x78   :  { %3680 = vmatprep.mubr.msk.f32.mxu0 %vm176_vm3, %v151_v49  ;;  %v4711_v50 = vpop.permute.xlu1 %119 }
  0x79   :  { %v4713_v51 = vpop.permute.xlu0 %87 }
  0x7a   :  { %v143_v52 = vsel %vm141_vm1, %v4611_v14, %v4713_v51 }
  0x7b   :  { %v152_v53 = vsel %vm150_vm2, %v143_v52, %v4711_v50 }
  0x7c   :  { %3681 = vmatmul.mubr.msk.f32.vlgmr.msra.gmra.mrb[0].mxu0 %vm176_vm3, %v152_v53  ;;  %v4721_v54 = vpop.permute.xlu1 %91 }
  0x7d   :  { %v4723_v55 = vpop.permute.xlu0 %89  ;;  %v145_v56 = vsel %vm141_vm1, %v4622_v17, %v4721_v54  ;;  %v4032_v17 = vpack.c.bf16 %v403_v16, %v402_v15 }
  0x7e   :  { %v144_v57 = vsel %vm141_vm1, %v4625_v18, %v4723_v55  ;;  %v3202_v18 = vld [vmem:[%s5750_s3] ss:$0 sm:$0xff] }
  0x7f   :  { %4033 = vmatprep.subr.bf16.mxu1 %v4032_v17 }
  0x80   :  { %v4731_v58 = vpop.permute.xlu1 %123  ;;  %4035 = vmatpush3.bf16.msra.mxu1 %v4032_v17 }
  0x81   :  { %v4733_v59 = vpop.permute.xlu0 %121  ;;  %v154_v61 = vsel %vm150_vm2, %v145_v56, %v4731_v58  ;;  %4037 = vmatprep.subr.bf16.mxu1 %v4036_v25 }
  0x82   :  { %v153_v60 = vsel %vm150_vm2, %v144_v57, %v4733_v59 }
  0x83   :  { %3683 = vmatprep.mubr.msk.f32.mxu0 %vm176_vm3, %v153_v60 }
  0x84   :  { %3684 = vmatmul.mubr.msk.f32.gmra.mrb[2].mxu0 %vm176_vm3, %v154_v61  ;;  %v4741_v62 = vpop.permute.xlu1 %95  ;;  %4039 = vmatpush3.bf16.msra.mxu1 %v4036_v25 }
  0x85   :  { %v4743_v63 = vpop.permute.xlu0 %93  ;;  %v147_v1 = vsel %vm141_vm1, %v4639_v24, %v4741_v62 }
  0x86   :  { %v146_v2 = vsel %vm141_vm1, %v84_v0, %v4743_v63 }
  0x88   :  { %v4753_v3 = vpop.permute.xlu1 %127 }
  0x89   :  { %v4755_v4 = vpop.permute.xlu0 %125  ;;  %v156_v6 = vsel %vm150_vm2, %v147_v1, %v4753_v3 }
  0x8a   :  { %v155_v5 = vsel %vm150_vm2, %v146_v2, %v4755_v4 }
  0x8b   :  { %3686 = vmatprep.mubr.msk.f32.mxu0 %vm176_vm3, %v155_v5 }
  0x8c   :  { %3687 = vmatmul.mubr.msk.f32.gmra.mrb[4].mxu0 %vm176_vm3, %v156_v6  ;;  %v4763_v7 = vpop.permute.xlu1 %99 }
  0x8d   :  { %v4765_v8 = vpop.permute.xlu0 %97  ;;  %v149_v9 = vsel %vm141_vm1, %v4659_v32, %v4763_v7 }
  0x8e   :  { %v148_v10 = vsel %vm141_vm1, %v4662_v33, %v4765_v8 }
  0x90   :  { %v4773_v11 = vpop.permute.xlu1 %131 }
  0x91   :  { %v4775_v12 = vpop.permute.xlu0 %129  ;;  %v158_v14 = vsel %vm150_vm2, %v149_v9, %v4773_v11 }
  0x92   :  { %v157_v13 = vsel %vm150_vm2, %v148_v10, %v4775_v12 }
  0x93   :  { %3689 = vmatprep.mubr.msk.f32.mxu0 %vm176_vm3, %v157_v13 }
  0x94   :  { %3690 = vmatmul.mubr.msk.f32.gmra.mrb[6].mxu0 %vm176_vm3, %v158_v14 }
 0x14f   :  { %v3682_v19 = vpop.f32.mrb[0].mxu0 }
 0x150   :  { %v273_v20 = vadd.f32 %v3682_v19, %v3202_v18  ;;  %v267_v21 = vpop.f32.mrb[1].mxu0 }
 0x151   :  { %v268_v24 = vadd.f32 %v3202_v18, %v267_v21 }
 0x152   :  { %4202 = vtanh.f32 %v273_v20  ;;  %v3212_v49 = vmul.f32 -1.442695, %v273_v20 }
 0x153   :  { %4204 = vtanh.f32 %v268_v24  ;;  %v3211_v48 = vmul.f32 -1.442695, %v268_v24 }
 0x157   :  { %v3685_v26 = vpop.f32.mrb[2].mxu0 }
 0x158   :  { %v283_v27 = vadd.f32 %v3685_v26, %v3202_v18  ;;  %v277_v28 = vpop.f32.mrb[3].mxu0 }
 0x159   :  { %v278_v29 = vadd.f32 %v3202_v18, %v277_v28 }
 0x15a   :  { %4206 = vtanh.f32 %v283_v27  ;;  %v3214_v53 = vmul.f32 -1.442695, %v283_v27 }
 0x15b   :  { %4208 = vtanh.f32 %v278_v29  ;;  %v3213_v52 = vmul.f32 -1.442695, %v278_v29 }
 0x15c   :  { %v4203_v30 = vpop.eup %4202 }
 0x15d   :  { %v4205_v31 = vpop.eup %4204  ;;  %372 = vrot.lane.b32.xlu1 %v4203_v30, %s4516_s16 }
 0x15e   :  { %370 = vrot.lane.b32.xlu0 %v4205_v31, %s4516_s16 }
 0x15f   :  { %v3688_v32 = vpop.f32.mrb[4].mxu0 }
 0x160   :  { %v293_v33 = vadd.f32 %v3688_v32, %v3202_v18  ;;  %v287_v34 = vpop.f32.mrb[5].mxu0 }
 0x161   :  { %v288_v35 = vadd.f32 %v3202_v18, %v287_v34 }
 0x162   :  { %4210 = vtanh.f32 %v293_v33  ;;  %v3216_v1 = vmul.f32 -1.442695, %v293_v33 }
 0x163   :  { %4212 = vtanh.f32 %v288_v35  ;;  %v3215_v0 = vmul.f32 -1.442695, %v288_v35 }
 0x164   :  { %v4207_v36 = vpop.eup %4206 }
 0x165   :  { %v4209_v37 = vpop.eup %4208  ;;  %376 = vrot.lane.b32.xlu1 %v4207_v36, %s4516_s16 }
 0x166   :  { %374 = vrot.lane.b32.xlu0 %v4209_v37, %s4516_s16 }
 0x167   :  { %v3691_v38 = vpop.f32.mrb[6].mxu0 }
 0x168   :  { %v303_v39 = vadd.f32 %v3691_v38, %v3202_v18  ;;  %v297_v40 = vpop.f32.mrb[7].mxu0 }
 0x169   :  { %v298_v41 = vadd.f32 %v3202_v18, %v297_v40 }
 0x16a   :  { %4214 = vtanh.f32 %v303_v39  ;;  %v3218_v13 = vmul.f32 -1.442695, %v303_v39 }
 0x16b   :  { %4216 = vtanh.f32 %v298_v41  ;;  %v3217_v10 = vmul.f32 -1.442695, %v298_v41 }
 0x16c   :  { %v4211_v42 = vpop.eup %4210  ;;  %4218 = vpow2.f32 %v3211_v48  ;;  %v3228_v48 = vld [vmem:[%s5749_s2 + $0x50] sm:$0xff] }
 0x16d   :  { %380 = vrot.lane.b32.xlu1 %v4211_v42, %s4516_s16  ;;  %v4213_v43 = vpop.eup %4212  ;;  %4220 = vpow2.f32 %v3212_v49  ;;  %v3229_v49 = vld [vmem:[%s5749_s2 + $0x58] sm:$0xff] }
 0x16e   :  { %378 = vrot.lane.b32.xlu0 %v4213_v43, %s4516_s16  ;;  %4222 = vpow2.f32 %v3213_v52  ;;  %v3230_v52 = vld [vmem:[%s5749_s2 + $0x60] sm:$0xff] }
 0x16f   :  { %4224 = vpow2.f32 %v3214_v53  ;;  %v4040_v53 = vpack.c.bf16 %v3229_v49, %v3228_v48 }
 0x171   :  { %4041 = vmatprep.subr.bf16.mxu1 %v4040_v53 }
 0x174   :  { %v4215_v44 = vpop.eup %4214 }
 0x175   :  { %384 = vrot.lane.b32.xlu1 %v4215_v44, %s4516_s16  ;;  %v4217_v45 = vpop.eup %4216 }
 0x176   :  { %382 = vrot.lane.b32.xlu0 %v4217_v45, %s4516_s16  ;;  %v4219_v56 = vpop.eup %4218 }
 0x177   :  { %v4221_v57 = vpop.eup %4220  ;;  %v330_v60 = vadd.f32 1.0, %v4219_v56  ;;  %v3231_v56 = vld [vmem:[%s5749_s2 + $0x68] sm:$0xff] }
 0x178   :  { %v331_v61 = vadd.f32 1.0, %v4221_v57  ;;  %v4223_v2 = vpop.eup %4222  ;;  %v4044_v57 = vpack.c.bf16 %v3231_v56, %v3230_v52 }
 0x179   :  { %4226 = vrcp.f32 %v330_v60  ;;  %v4225_v5 = vpop.eup %4224  ;;  %v332_v6 = vadd.f32 1.0, %v4223_v2  ;;  %v3232_v60 = vld [vmem:[%s5749_s2 + $0x70] sm:$0xff]  ;;  %v3235_v2 = vld [vmem:[%s5749_s2 + $0x88] sm:$0xff] }
 0x17a   :  { %4228 = vrcp.f32 %v331_v61  ;;  %v333_v9 = vadd.f32 1.0, %v4225_v5  ;;  %v3233_v61 = vld [vmem:[%s5749_s2 + $0x78] sm:$0xff] }
 0x17b   :  { %4230 = vpow2.f32 %v3215_v0  ;;  %v4048_v0 = vpack.c.bf16 %v3233_v61, %v3232_v60 }
 0x17c   :  { %4232 = vpow2.f32 %v3216_v1  ;;  %v3234_v1 = vld [vmem:[%s5749_s2 + $0x80] sm:$0xff] }
 0x17d   :  { %4234 = vrcp.f32 %v332_v6  ;;  %v4052_v5 = vpack.c.bf16 %v3235_v2, %v3234_v1  ;;  %v3236_v6 = vld [vmem:[%s5749_s2 + $0x90] sm:$0xff] }
 0x17e   :  { %4236 = vrcp.f32 %v333_v9  ;;  %v3237_v9 = vld [vmem:[%s5749_s2 + $0x98] sm:$0xff] }
 0x17f   :  { %4238 = vpow2.f32 %v3217_v10  ;;  %v4056_v10 = vpack.c.bf16 %v3237_v9, %v3236_v6 }
 0x180   :  { %4240 = vpow2.f32 %v3218_v13  ;;  %v3219_v13 = vld [vmem:[%s5752_s5] ss:$0 sm:$0xff] }
 0x183   :  { %v4227_v15 = vpop.eup %4226 }
 0x184   :  { %v4229_v17 = vpop.eup %4228 }
 0x185   :  { %v4231_v19 = vpop.eup %4230 }
 0x186   :  { %v4233_v21 = vpop.eup %4232  ;;  %v334_v22 = vadd.f32 1.0, %v4231_v19 }
 0x187   :  { %v335_v23 = vadd.f32 1.0, %v4233_v21  ;;  %v4235_v25 = vpop.eup %4234 }
 0x188   :  { %v4237_v27 = vpop.eup %4236  ;;  %4242 = vrcp.f32 %v334_v22 }
 0x189   :  { %v4239_v29 = vpop.eup %4238  ;;  %4244 = vrcp.f32 %v335_v23 }
 0x18a   :  { %v4241_v31 = vpop.eup %4240  ;;  %v336_v32 = vadd.f32 1.0, %v4239_v29 }
 0x18b   :  { %v337_v33 = vadd.f32 1.0, %v4241_v31 }
 0x18c   :  { %4246 = vrcp.f32 %v336_v32 }
 0x18d   :  { %4248 = vrcp.f32 %v337_v33 }
 0x192   :  { %v4243_v35 = vpop.eup %4242 }
 0x193   :  { %v4245_v37 = vpop.eup %4244 }
 0x196   :  { %v4247_v41 = vpop.eup %4246 }
 0x197   :  { %v4249_v43 = vpop.eup %4248 }
 0x1cf   :  { %v373_v14 = vpop.permute.xlu1 %372 }
 0x1d0   :  { %v371_v16 = vpop.permute.xlu0 %370  ;;  %v395_v20 = vmul.f32 %v4229_v17, %v373_v14 }
 0x1d1   :  { %v394_v18 = vmul.f32 %v4227_v15, %v371_v16 }
 0x1d3   :  { %3700 = vmatprep.mubr.msk.f32.mxu1 %vm141_vm1, %v394_v18 }
 0x1d4   :  { %3701 = vmatmul.mubr.msk.f32.vlgmr.msra.gmra.mrb[0].mxu1 %vm141_vm1, %v395_v20 }
 0x1d5   :  { %4043 = vmatpush3.bf16.msra.mxu1 %v4040_v53 }
 0x1d6   :  { %4045 = vmatprep.subr.bf16.mxu1 %v4044_v57 }
 0x1d7   :  { %v377_v24 = vpop.permute.xlu1 %376 }
 0x1d8   :  { %v375_v26 = vpop.permute.xlu0 %374  ;;  %v397_v30 = vmul.f32 %v4237_v27, %v377_v24 }
 0x1d9   :  { %v396_v28 = vmul.f32 %v4235_v25, %v375_v26  ;;  %4047 = vmatpush3.bf16.msra.mxu1 %v4044_v57 }
 0x1da   :  { %4049 = vmatprep.subr.bf16.mxu1 %v4048_v0 }
 0x1db   :  { %3703 = vmatprep.mubr.msk.f32.mxu1 %vm141_vm1, %v396_v28 }
 0x1dc   :  { %3704 = vmatmul.mubr.msk.f32.gmra.mrb[2].mxu1 %vm141_vm1, %v397_v30 }
 0x1dd   :  { %4051 = vmatpush3.bf16.msra.mxu1 %v4048_v0 }
 0x1de   :  { %4053 = vmatprep.subr.bf16.mxu1 %v4052_v5 }
 0x1df   :  { %v381_v34 = vpop.permute.xlu1 %380 }
 0x1e0   :  { %v379_v36 = vpop.permute.xlu0 %378  ;;  %v399_v39 = vmul.f32 %v4245_v37, %v381_v34 }
 0x1e1   :  { %v398_v38 = vmul.f32 %v4243_v35, %v379_v36  ;;  %4055 = vmatpush3.bf16.msra.mxu1 %v4052_v5 }
 0x1e2   :  { %4057 = vmatprep.subr.bf16.mxu1 %v4056_v10 }
 0x1e3   :  { %3706 = vmatprep.mubr.msk.f32.mxu1 %vm141_vm1, %v398_v38 }
 0x1e4   :  { %3707 = vmatmul.mubr.msk.f32.gmra.mrb[4].mxu1 %vm141_vm1, %v399_v39 }
 0x1e5   :  { %4059 = vmatpush3.bf16.msra.mxu1 %v4056_v10 }
 0x1e7   :  { %v385_v40 = vpop.permute.xlu1 %384 }
 0x1e8   :  { %v383_v42 = vpop.permute.xlu0 %382  ;;  %v401_v45 = vmul.f32 %v4249_v43, %v385_v40 }
 0x1e9   :  { %v400_v44 = vmul.f32 %v4247_v41, %v383_v42 }
 0x1eb   :  { %3709 = vmatprep.mubr.msk.f32.mxu1 %vm141_vm1, %v400_v44 }
 0x1ec   :  { %3710 = vmatmul.mubr.msk.f32.gmra.mrb[6].mxu1 %vm141_vm1, %v401_v45 }
 0x2a7   :  { %v3702_v14 = vpop.f32.mrb[0].mxu1 }
 0x2a8   :  { %v4847_v15 = vadd.f32 %v3702_v14, %v3219_v13  ;;  %v503_v16 = vpop.f32.mrb[1].mxu1 }
 0x2a9   :  { %v4849_v17 = vadd.f32 %v3219_v13, %v503_v16 }
 0x2aa   :  { %v4853_v18 = vadd.f32 %v4847_v15, %v4713_v51 }
 0x2ab   :  { %v4857_v19 = vadd.f32 %v4849_v17, %v4704_v47 }
 0x2ac   :  { %v564_v20 = vrot.slane %v4853_v18, 6 }
 0x2ad   :  { %v563_v21 = vrot.slane %v4857_v19, 6 }
 0x2af   :  { %v3705_v22 = vpop.f32.mrb[2].mxu1  ;;  %570 = vrot.lane.b32.xlu0 %v563_v21, %s4516_s16  ;;  %v565_v23 = vsel %vm562_vm4, %v563_v21, %v564_v20 }
 0x2b0   :  { %v4863_v24 = vadd.f32 %v3705_v22, %v3219_v13  ;;  %v513_v25 = vpop.f32.mrb[3].mxu1  ;;  %572 = vrot.lane.b32.xlu1 %v565_v23, %s4516_s16 }
 0x2b1   :  { %v4866_v51 = vadd.f32 %v3219_v13, %v513_v25 }
 0x2b2   :  { %v4870_v47 = vadd.f32 %v4863_v24, %v4721_v54 }
 0x2b3   :  { %v4874_v26 = vadd.f32 %v4866_v51, %v4723_v55 }
 0x2b4   :  { %v568_v27 = vrot.slane %v4870_v47, 6 }
 0x2b5   :  { %v566_v28 = vrot.slane %v4874_v26, 6 }
 0x2b7   :  { %v567_v29 = vsel %vm562_vm4, %v564_v20, %v566_v28  ;;  %v569_v30 = vsel %vm562_vm4, %v566_v28, %v568_v27  ;;  %v3708_v31 = vpop.f32.mrb[4].mxu1  ;;  %v3256_v28 = vld [vmem:[%s5751_s4 + $0x20] sm:$0xff] }
 0x2b8   :  { %574 = vrot.lane.b32.xlu0 %v567_v29, %s4516_s16  ;;  %576 = vrot.lane.b32.xlu1 %v569_v30, %s4516_s16  ;;  %v4882_v32 = vadd.f32 %v3708_v31, %v3219_v13  ;;  %v523_v54 = vpop.f32.mrb[5].mxu1  ;;  %v3257_v29 = vld [vmem:[%s5751_s4 + $0x28] sm:$0xff]  ;;  %v3239_v31 = vld [vmem:[%s5750_s3 + $0x1] ss:$0 sm:$0xff] }
 0x2b9   :  { %v4884_v33 = vadd.f32 %v3219_v13, %v523_v54  ;;  %v4060_v30 = vpack.c.bf16 %v3257_v29, %v3256_v28 }
 0x2ba   :  { %v4888_v55 = vadd.f32 %v4882_v32, %v4741_v62 }
 0x2bb   :  { %v4892_v34 = vadd.f32 %v4884_v33, %v4743_v63  ;;  %4061 = vmatprep.subr.bf16.mxu0 %v4060_v30 }
 0x2bc   :  { %v587_v35 = vrot.slane %v4888_v55, 6  ;;  %4063 = vmatpush3.bf16.msra.mxu0 %v4060_v30 }
 0x2bd   :  { %v586_v36 = vrot.slane %v4892_v34, 6 }
 0x2bf   :  { %v3711_v37 = vpop.f32.mrb[6].mxu1  ;;  %593 = vrot.lane.b32.xlu0 %v586_v36, %s4516_s16  ;;  %v588_v38 = vsel %vm562_vm4, %v586_v36, %v587_v35 }
 0x2c0   :  { %v4898_v39 = vadd.f32 %v3711_v37, %v3219_v13  ;;  %v533_v40 = vpop.f32.mrb[7].mxu1  ;;  %595 = vrot.lane.b32.xlu1 %v588_v38, %s4516_s16  ;;  %v3258_v37 = vld [vmem:[%s5751_s4 + $0x30] sm:$0xff]  ;;  %v3259_v38 = vld [vmem:[%s5751_s4 + $0x38] sm:$0xff] }
 0x2c1   :  { %v4901_v62 = vadd.f32 %v3219_v13, %v533_v40 }
 0x2c2   :  { %v4905_v63 = vadd.f32 %v4898_v39, %v4763_v7 }
 0x2c3   :  { %v4909_v41 = vadd.f32 %v4901_v62, %v4765_v8 }
 0x2c4   :  { %v591_v42 = vrot.slane %v4905_v63, 6 }
 0x2c5   :  { %v589_v43 = vrot.slane %v4909_v41, 6 }
 0x2c7   :  { %v590_v44 = vsel %vm562_vm4, %v587_v35, %v589_v43  ;;  %v592_v45 = vsel %vm562_vm4, %v589_v43, %v591_v42  ;;  %v4064_v42 = vpack.c.bf16 %v3259_v38, %v3258_v37 }
 0x2c8   :  { %597 = vrot.lane.b32.xlu0 %v590_v44, %s4516_s16  ;;  %599 = vrot.lane.b32.xlu1 %v592_v45, %s4516_s16 }
 0x2c9   :  { %4065 = vmatprep.subr.bf16.mxu0 %v4064_v42 }
 0x2ca   :  { %4067 = vmatpush3.bf16.msra.mxu0 %v4064_v42 }
 0x321   :  { %v571_v48 = vpop.permute.xlu0 %570 }
 0x322   :  { %v605_v7 = vsel %vm562_vm4, 0.0, %v571_v48  ;;  %v573_v49 = vpop.permute.xlu1 %572 }
 0x323   :  { %v607_v8 = vsel %vm141_vm1, %v605_v7, %v4857_v19  ;;  %v608_v52 = vsel %vm141_vm1, %v573_v49, %v4853_v18 }
 0x324   :  { %v616_v53 = vsel %vm150_vm2, %v608_v52, %v4711_v50  ;;  %v615_v56 = vsel %vm150_vm2, %v607_v8, %v4702_v46 }
 0x325   :  { %3732 = vmatprep.mubr.msk.f32.mxu1 %vm176_vm3, %v615_v56 }
 0x326   :  { %3733 = vmatmul.mubr.msk.f32.vlgmr.msra.gmra.mrb[8].mxu1 %vm176_vm3, %v616_v53 }
 0x32a   :  { %v575_v57 = vpop.permute.xlu0 %574  ;;  %v577_v60 = vpop.permute.xlu1 %576 }
 0x32b   :  { %v609_v61 = vsel %vm141_vm1, %v575_v57, %v4874_v26  ;;  %v610_v0 = vsel %vm141_vm1, %v577_v60, %v4870_v47 }
 0x32c   :  { %v617_v1 = vsel %vm150_vm2, %v609_v61, %v4733_v59  ;;  %v618_v2 = vsel %vm150_vm2, %v610_v0, %v4731_v58 }
 0x32d   :  { %3735 = vmatprep.mubr.msk.f32.mxu1 %vm176_vm3, %v617_v1 }
 0x32e   :  { %3736 = vmatmul.mubr.msk.f32.gmra.mrb[10].mxu1 %vm176_vm3, %v618_v2 }
 0x331   :  { %v594_v5 = vpop.permute.xlu0 %593 }
 0x332   :  { %v606_v6 = vsel %vm562_vm4, 0.0, %v594_v5  ;;  %v596_v9 = vpop.permute.xlu1 %595 }
 0x333   :  { %v611_v10 = vsel %vm141_vm1, %v606_v6, %v4892_v34  ;;  %v612_v13 = vsel %vm141_vm1, %v596_v9, %v4888_v55 }
 0x334   :  { %v619_v14 = vsel %vm150_vm2, %v611_v10, %v4755_v4  ;;  %v620_v16 = vsel %vm150_vm2, %v612_v13, %v4753_v3 }
 0x335   :  { %3738 = vmatprep.mubr.msk.f32.mxu1 %vm176_vm3, %v619_v14 }
 0x336   :  { %3739 = vmatmul.mubr.msk.f32.gmra.mrb[12].mxu1 %vm176_vm3, %v620_v16 }
 0x33a   :  { %v598_v20 = vpop.permute.xlu0 %597  ;;  %v600_v21 = vpop.permute.xlu1 %599 }
 0x33b   :  { %v613_v22 = vsel %vm141_vm1, %v598_v20, %v4909_v41  ;;  %v614_v23 = vsel %vm141_vm1, %v600_v21, %v4905_v63 }
 0x33c   :  { %v621_v25 = vsel %vm150_vm2, %v613_v22, %v4775_v12  ;;  %v622_v27 = vsel %vm150_vm2, %v614_v23, %v4773_v11 }
 0x33d   :  { %3741 = vmatprep.mubr.msk.f32.mxu1 %vm176_vm3, %v621_v25 }
 0x33e   :  { %3742 = vmatmul.mubr.msk.f32.gmra.mrb[14].mxu1 %vm176_vm3, %v622_v27 }
 0x3f9   :  { %v3734_v54 = vpop.f32.mrb[8].mxu1 }
 0x3fa   :  { %v738_v35 = vadd.f32 %v3734_v54, %v3239_v31  ;;  %v732_v36 = vpop.f32.mrb[9].mxu1 }
 0x3fb   :  { %v733_v40 = vadd.f32 %v3239_v31, %v732_v36 }
 0x3fc   :  { %4250 = vtanh.f32 %v738_v35  ;;  %v3249_v14 = vmul.f32 -1.442695, %v738_v35 }
 0x3fd   :  { %4252 = vtanh.f32 %v733_v40  ;;  %v3248_v13 = vmul.f32 -1.442695, %v733_v40 }
 0x401   :  { %v3737_v43 = vpop.f32.mrb[10].mxu1 }
 0x402   :  { %v748_v44 = vadd.f32 %v3737_v43, %v3239_v31  ;;  %v742_v45 = vpop.f32.mrb[11].mxu1 }
 0x403   :  { %v743_v48 = vadd.f32 %v3239_v31, %v742_v45 }
 0x404   :  { %4254 = vtanh.f32 %v748_v44  ;;  %v3251_v20 = vmul.f32 -1.442695, %v748_v44 }
 0x405   :  { %4256 = vtanh.f32 %v743_v48  ;;  %v3250_v16 = vmul.f32 -1.442695, %v743_v48 }
 0x406   :  { %v4251_v7 = vpop.eup %4250 }
 0x407   :  { %v4253_v49 = vpop.eup %4252  ;;  %837 = vrot.lane.b32.xlu1 %v4251_v7, %s4516_s16 }
 0x408   :  { %835 = vrot.lane.b32.xlu0 %v4253_v49, %s4516_s16 }
 0x409   :  { %v3740_v8 = vpop.f32.mrb[12].mxu1 }
 0x40a   :  { %v758_v52 = vadd.f32 %v3740_v8, %v3239_v31  ;;  %v752_v53 = vpop.f32.mrb[13].mxu1 }
 0x40b   :  { %v753_v57 = vadd.f32 %v3239_v31, %v752_v53 }
 0x40c   :  { %4258 = vtanh.f32 %v758_v52  ;;  %v3253_v28 = vmul.f32 -1.442695, %v758_v52 }
 0x40d   :  { %4260 = vtanh.f32 %v753_v57  ;;  %v3252_v27 = vmul.f32 -1.442695, %v753_v57 }
 0x40e   :  { %v4255_v56 = vpop.eup %4254 }
 0x40f   :  { %v4257_v60 = vpop.eup %4256  ;;  %841 = vrot.lane.b32.xlu1 %v4255_v56, %s4516_s16 }
 0x410   :  { %839 = vrot.lane.b32.xlu0 %v4257_v60, %s4516_s16 }
 0x411   :  { %v3743_v61 = vpop.f32.mrb[14].mxu1 }
 0x412   :  { %v768_v0 = vadd.f32 %v3743_v61, %v3239_v31  ;;  %v762_v1 = vpop.f32.mrb[15].mxu1 }
 0x413   :  { %v763_v2 = vadd.f32 %v3239_v31, %v762_v1 }
 0x414   :  { %4262 = vtanh.f32 %v768_v0  ;;  %v3255_v36 = vmul.f32 -1.442695, %v768_v0 }
 0x415   :  { %4264 = vtanh.f32 %v763_v2  ;;  %v3254_v35 = vmul.f32 -1.442695, %v763_v2 }
 0x416   :  { %v4259_v5 = vpop.eup %4258  ;;  %4266 = vpow2.f32 %v3248_v13 }
 0x417   :  { %v4261_v6 = vpop.eup %4260  ;;  %845 = vrot.lane.b32.xlu1 %v4259_v5, %s4516_s16  ;;  %4268 = vpow2.f32 %v3249_v14 }
 0x418   :  { %843 = vrot.lane.b32.xlu0 %v4261_v6, %s4516_s16  ;;  %4270 = vpow2.f32 %v3250_v16 }
 0x419   :  { %4272 = vpow2.f32 %v3251_v20 }
 0x41e   :  { %v4263_v9 = vpop.eup %4262 }
 0x41f   :  { %v4265_v10 = vpop.eup %4264  ;;  %849 = vrot.lane.b32.xlu1 %v4263_v9, %s4516_s16 }
 0x420   :  { %847 = vrot.lane.b32.xlu0 %v4265_v10, %s4516_s16  ;;  %v4267_v21 = vpop.eup %4266 }
 0x421   :  { %v4269_v22 = vpop.eup %4268  ;;  %v795_v23 = vadd.f32 1.0, %v4267_v21 }
 0x422   :  { %v796_v25 = vadd.f32 1.0, %v4269_v22  ;;  %v4271_v29 = vpop.eup %4270 }
 0x423   :  { %4274 = vrcp.f32 %v795_v23  ;;  %v4273_v30 = vpop.eup %4272  ;;  %v797_v31 = vadd.f32 1.0, %v4271_v29  ;;  %v3272_v29 = vld [vmem:[%s5749_s2 + $0xb0] sm:$0xff] }
 0x424   :  { %4276 = vrcp.f32 %v796_v25  ;;  %v798_v54 = vadd.f32 1.0, %v4273_v30 }
 0x425   :  { %4278 = vpow2.f32 %v3252_v27  ;;  %v3270_v27 = vld [vmem:[%s5749_s2 + $0xa0] sm:$0xff] }
 0x426   :  { %4280 = vpow2.f32 %v3253_v28  ;;  %v3271_v28 = vld [vmem:[%s5749_s2 + $0xa8] sm:$0xff] }
 0x427   :  { %4282 = vrcp.f32 %v797_v31  ;;  %v4068_v30 = vpack.c.bf16 %v3271_v28, %v3270_v27  ;;  %v3273_v31 = vld [vmem:[%s5749_s2 + $0xb8] sm:$0xff] }
 0x428   :  { %4284 = vrcp.f32 %v798_v54  ;;  %v4072_v54 = vpack.c.bf16 %v3273_v31, %v3272_v29 }
 0x429   :  { %4286 = vpow2.f32 %v3254_v35  ;;  %v3274_v35 = vld [vmem:[%s5749_s2 + $0xc0] sm:$0xff]  ;;  %4069 = vmatprep.subr.bf16.mxu1 %v4068_v30 }
 0x42a   :  { %4288 = vpow2.f32 %v3255_v36  ;;  %v3275_v36 = vld [vmem:[%s5749_s2 + $0xc8] sm:$0xff]  ;;  %4071 = vmatpush3.bf16.msra.mxu1 %v4068_v30 }
 0x42b   :  { %4073 = vmatprep.subr.bf16.mxu1 %v4072_v54 }
 0x42d   :  { %v4275_v38 = vpop.eup %4274 }
 0x42e   :  { %v4277_v42 = vpop.eup %4276  ;;  %4075 = vmatpush3.bf16.msra.mxu1 %v4072_v54 }
 0x42f   :  { %v4279_v44 = vpop.eup %4278 }
 0x430   :  { %v4281_v48 = vpop.eup %4280  ;;  %v799_v7 = vadd.f32 1.0, %v4279_v44  ;;  %v3279_v44 = vld [vmem:[%s5749_s2 + $0xe8] sm:$0xff] }
 0x431   :  { %v800_v49 = vadd.f32 1.0, %v4281_v48  ;;  %v4283_v52 = vpop.eup %4282  ;;  %v3261_v48 = vld [vmem:[%s5752_s5 + $0x1] ss:$0 sm:$0xff] }
 0x432   :  { %v4285_v56 = vpop.eup %4284  ;;  %4290 = vrcp.f32 %v799_v7 }
 0x433   :  { %v4287_v60 = vpop.eup %4286  ;;  %4292 = vrcp.f32 %v800_v49 }
 0x434   :  { %v4289_v0 = vpop.eup %4288  ;;  %v801_v1 = vadd.f32 1.0, %v4287_v60 }
 0x435   :  { %v802_v2 = vadd.f32 1.0, %v4289_v0 }
 0x436   :  { %4294 = vrcp.f32 %v801_v1 }
 0x437   :  { %4296 = vrcp.f32 %v802_v2 }
 0x43c   :  { %v4291_v6 = vpop.eup %4290 }
 0x43d   :  { %v4293_v10 = vpop.eup %4292 }
 0x440   :  { %v4295_v20 = vpop.eup %4294 }
 0x441   :  { %v4297_v22 = vpop.eup %4296 }
 0x479   :  { %v838_v37 = vpop.permute.xlu1 %837 }
 0x47a   :  { %v836_v40 = vpop.permute.xlu0 %835  ;;  %v860_v45 = vmul.f32 %v4277_v42, %v838_v37  ;;  %v4076_v37 = vpack.c.bf16 %v3275_v36, %v3274_v35 }
 0x47b   :  { %v859_v43 = vmul.f32 %v4275_v38, %v836_v40  ;;  %v3276_v38 = vld [vmem:[%s5749_s2 + $0xd0] sm:$0xff]  ;;  %v3277_v40 = vld [vmem:[%s5749_s2 + $0xd8] sm:$0xff] }
 0x47c   :  { %4077 = vmatprep.subr.bf16.mxu1 %v4076_v37  ;;  %v4080_v42 = vpack.c.bf16 %v3277_v40, %v3276_v38 }
 0x47d   :  { %3752 = vmatprep.mubr.msk.f32.mxu0 %vm141_vm1, %v859_v43  ;;  %4079 = vmatpush3.bf16.msra.mxu1 %v4076_v37  ;;  %v3278_v43 = vld [vmem:[%s5749_s2 + $0xe0] sm:$0xff] }
 0x47e   :  { %3753 = vmatmul.mubr.msk.f32.vlgmr.msra.gmra.mrb[8].mxu0 %vm141_vm1, %v860_v45  ;;  %4081 = vmatprep.subr.bf16.mxu1 %v4080_v42  ;;  %v4084_v45 = vpack.c.bf16 %v3279_v44, %v3278_v43 }
 0x481   :  { %v842_v8 = vpop.permute.xlu1 %841  ;;  %4083 = vmatpush3.bf16.msra.mxu1 %v4080_v42 }
 0x482   :  { %v840_v53 = vpop.permute.xlu0 %839  ;;  %v862_v61 = vmul.f32 %v4285_v56, %v842_v8  ;;  %4085 = vmatprep.subr.bf16.mxu1 %v4084_v45 }
 0x483   :  { %v861_v57 = vmul.f32 %v4283_v52, %v840_v53 }
 0x485   :  { %3755 = vmatprep.mubr.msk.f32.mxu0 %vm141_vm1, %v861_v57  ;;  %4087 = vmatpush3.bf16.msra.mxu1 %v4084_v45 }
 0x486   :  { %3756 = vmatmul.mubr.msk.f32.gmra.mrb[10].mxu0 %vm141_vm1, %v862_v61 }
 0x489   :  { %v846_v5 = vpop.permute.xlu1 %845 }
 0x48a   :  { %v844_v9 = vpop.permute.xlu0 %843  ;;  %v864_v14 = vmul.f32 %v4293_v10, %v846_v5 }
 0x48b   :  { %v863_v13 = vmul.f32 %v4291_v6, %v844_v9 }
 0x48d   :  { %3758 = vmatprep.mubr.msk.f32.mxu0 %vm141_vm1, %v863_v13 }
 0x48e   :  { %3759 = vmatmul.mubr.msk.f32.gmra.mrb[12].mxu0 %vm141_vm1, %v864_v14 }
 0x491   :  { %v850_v16 = vpop.permute.xlu1 %849 }
 0x492   :  { %v848_v21 = vpop.permute.xlu0 %847  ;;  %v866_v25 = vmul.f32 %v4297_v22, %v850_v16 }
 0x493   :  { %v865_v23 = vmul.f32 %v4295_v20, %v848_v21 }
 0x495   :  { %3761 = vmatprep.mubr.msk.f32.mxu0 %vm141_vm1, %v865_v23 }
 0x496   :  { %3762 = vmatmul.mubr.msk.f32.gmra.mrb[14].mxu0 %vm141_vm1, %v866_v25 }
 0x551   :  { %v3754_v7 = vpop.f32.mrb[8].mxu0 }
 0x552   :  { %v5023_v49 = vadd.f32 %v3754_v7, %v3261_v48  ;;  %v970_v8 = vpop.f32.mrb[9].mxu0 }
 0x553   :  { %v5025_v52 = vadd.f32 %v3261_v48, %v970_v8 }
 0x554   :  { %v5029_v53 = vadd.f32 %v5023_v49, %v4853_v18 }
 0x555   :  { %v5033_v56 = vadd.f32 %v5025_v52, %v4857_v19 }
 0x556   :  { %v1031_v57 = vrot.slane %v5029_v53, 4 }
 0x557   :  { %v1030_v60 = vrot.slane %v5033_v56, 4 }
 0x559   :  { %1037 = vrot.lane.b32.xlu0 %v1030_v60, %s4516_s16  ;;  %v3757_v61 = vpop.f32.mrb[10].mxu0  ;;  %v1032_v0 = vsel %vm1029_vm5, %v1030_v60, %v1031_v57 }
 0x55a   :  { %v5039_v1 = vadd.f32 %v3757_v61, %v3261_v48  ;;  %1039 = vrot.lane.b32.xlu1 %v1032_v0, %s4516_s16  ;;  %v980_v18 = vpop.f32.mrb[11].mxu0 }
 0x55b   :  { %v5042_v2 = vadd.f32 %v3261_v48, %v980_v18 }
 0x55c   :  { %v5046_v19 = vadd.f32 %v5039_v1, %v4870_v47 }
 0x55d   :  { %v5050_v5 = vadd.f32 %v5042_v2, %v4874_v26 }
 0x55e   :  { %v1035_v6 = vrot.slane %v5046_v19, 4 }
 0x55f   :  { %v1033_v9 = vrot.slane %v5050_v5, 4 }
 0x561   :  { %v1036_v10 = vsel %vm1029_vm5, %v1033_v9, %v1035_v6  ;;  %v1034_v13 = vsel %vm1029_vm5, %v1031_v57, %v1033_v9  ;;  %v3760_v14 = vpop.f32.mrb[12].mxu0 }
 0x562   :  { %1043 = vrot.lane.b32.xlu1 %v1036_v10, %s4516_s16  ;;  %1041 = vrot.lane.b32.xlu0 %v1034_v13, %s4516_s16  ;;  %v5058_v16 = vadd.f32 %v3760_v14, %v3261_v48  ;;  %v990_v47 = vpop.f32.mrb[13].mxu0 }
 0x563   :  { %v5060_v20 = vadd.f32 %v3261_v48, %v990_v47 }
 0x564   :  { %v5064_v26 = vadd.f32 %v5058_v16, %v4888_v55 }
 0x565   :  { %v5068_v21 = vadd.f32 %v5060_v20, %v4892_v34 }
 0x566   :  { %v1054_v22 = vrot.slane %v5064_v26, 4 }
 0x567   :  { %v1053_v23 = vrot.slane %v5068_v21, 4 }
 0x569   :  { %1060 = vrot.lane.b32.xlu0 %v1053_v23, %s4516_s16  ;;  %v3763_v25 = vpop.f32.mrb[14].mxu0  ;;  %v1055_v27 = vsel %vm1029_vm5, %v1053_v23, %v1054_v22 }
 0x56a   :  { %v5074_v28 = vadd.f32 %v3763_v25, %v3261_v48  ;;  %1062 = vrot.lane.b32.xlu1 %v1055_v27, %s4516_s16  ;;  %v1000_v29 = vpop.f32.mrb[15].mxu0  ;;  %v3298_v27 = vld [vmem:[%s5751_s4 + $0x40] sm:$0xff] }
 0x56b   :  { %v5077_v55 = vadd.f32 %v3261_v48, %v1000_v29  ;;  %v3299_v29 = vld [vmem:[%s5751_s4 + $0x48] sm:$0xff] }
 0x56c   :  { %v5081_v34 = vadd.f32 %v5074_v28, %v4905_v63 }
 0x56d   :  { %v5085_v30 = vadd.f32 %v5077_v55, %v4909_v41 }
 0x56e   :  { %v1058_v31 = vrot.slane %v5081_v34, 4 }
 0x56f   :  { %v1056_v54 = vrot.slane %v5085_v30, 4 }
 0x571   :  { %v1059_v35 = vsel %vm1029_vm5, %v1056_v54, %v1058_v31  ;;  %v1057_v36 = vsel %vm1029_vm5, %v1054_v22, %v1056_v54  ;;  %v4088_v31 = vpack.c.bf16 %v3299_v29, %v3298_v27  ;;  %v3281_v54 = vld [vmem:[%s5750_s3 + $0x2] ss:$0 sm:$0xff] }
 0x572   :  { %1066 = vrot.lane.b32.xlu1 %v1059_v35, %s4516_s16  ;;  %1064 = vrot.lane.b32.xlu0 %v1057_v36, %s4516_s16 }
 0x573   :  { %4089 = vmatprep.subr.bf16.mxu0 %v4088_v31 }
 0x574   :  { %4091 = vmatpush3.bf16.msra.mxu0 %v4088_v31 }
 0x5cb   :  { %v1038_v37 = vpop.permute.xlu0 %1037 }
 0x5cc   :  { %v1072_v63 = vsel %vm1029_vm5, 0.0, %v1038_v37  ;;  %v1040_v38 = vpop.permute.xlu1 %1039 }
 0x5cd   :  { %v1074_v41 = vsel %vm141_vm1, %v1072_v63, %v5033_v56  ;;  %v1075_v40 = vsel %vm141_vm1, %v1040_v38, %v5029_v53  ;;  %v3300_v63 = vld [vmem:[%s5751_s4 + $0x50] sm:$0xff]  ;;  %v3301_v38 = vld [vmem:[%s5751_s4 + $0x58] sm:$0xff] }
 0x5ce   :  { %v1083_v42 = vsel %vm150_vm2, %v1075_v40, %v4711_v50  ;;  %v1082_v43 = vsel %vm150_vm2, %v1074_v41, %v4702_v46  ;;  %v4092_v40 = vpack.c.bf16 %v3301_v38, %v3300_v63 }
 0x5cf   :  { %3784 = vmatprep.mubr.msk.f32.mxu1 %vm176_vm3, %v1082_v43 }
 0x5d0   :  { %3785 = vmatmul.mubr.msk.f32.vlgmr.msra.gmra.mrb[16].mxu1 %vm176_vm3, %v1083_v42  ;;  %4093 = vmatprep.subr.bf16.mxu0 %v4092_v40 }
 0x5d1   :  { %4095 = vmatpush3.bf16.msra.mxu0 %v4092_v40 }
 0x5d4   :  { %v1042_v44 = vpop.permute.xlu0 %1041  ;;  %v1044_v45 = vpop.permute.xlu1 %1043 }
 0x5d5   :  { %v1076_v48 = vsel %vm141_vm1, %v1042_v44, %v5050_v5  ;;  %v1077_v7 = vsel %vm141_vm1, %v1044_v45, %v5046_v19 }
 0x5d6   :  { %v1084_v8 = vsel %vm150_vm2, %v1076_v48, %v4733_v59  ;;  %v1085_v57 = vsel %vm150_vm2, %v1077_v7, %v4731_v58 }
 0x5d7   :  { %3787 = vmatprep.mubr.msk.f32.mxu1 %vm176_vm3, %v1084_v8 }
 0x5d8   :  { %3788 = vmatmul.mubr.msk.f32.gmra.mrb[18].mxu1 %vm176_vm3, %v1085_v57 }
 0x5db   :  { %v1061_v60 = vpop.permute.xlu0 %1060 }
 0x5dc   :  { %v1073_v61 = vsel %vm1029_vm5, 0.0, %v1061_v60  ;;  %v1063_v0 = vpop.permute.xlu1 %1062 }
 0x5dd   :  { %v1078_v18 = vsel %vm141_vm1, %v1073_v61, %v5068_v21  ;;  %v1079_v6 = vsel %vm141_vm1, %v1063_v0, %v5064_v26 }
 0x5de   :  { %v1086_v9 = vsel %vm150_vm2, %v1078_v18, %v4755_v4  ;;  %v1087_v10 = vsel %vm150_vm2, %v1079_v6, %v4753_v3 }
 0x5df   :  { %3790 = vmatprep.mubr.msk.f32.mxu1 %vm176_vm3, %v1086_v9 }
 0x5e0   :  { %3791 = vmatmul.mubr.msk.f32.gmra.mrb[20].mxu1 %vm176_vm3, %v1087_v10 }
 0x5e4   :  { %v1065_v13 = vpop.permute.xlu0 %1064  ;;  %v1067_v14 = vpop.permute.xlu1 %1066 }
 0x5e5   :  { %v1080_v47 = vsel %vm141_vm1, %v1065_v13, %v5085_v30  ;;  %v1081_v22 = vsel %vm141_vm1, %v1067_v14, %v5081_v34 }
 0x5e6   :  { %v1088_v23 = vsel %vm150_vm2, %v1080_v47, %v4775_v12  ;;  %v1089_v25 = vsel %vm150_vm2, %v1081_v22, %v4773_v11 }
 0x5e7   :  { %3793 = vmatprep.mubr.msk.f32.mxu1 %vm176_vm3, %v1088_v23 }
 0x5e8   :  { %3794 = vmatmul.mubr.msk.f32.gmra.mrb[22].mxu1 %vm176_vm3, %v1089_v25 }
 0x6a3   :  { %v3786_v35 = vpop.f32.mrb[16].mxu1 }
 0x6a4   :  { %v1205_v36 = vadd.f32 %v3786_v35, %v3281_v54  ;;  %v1199_v37 = vpop.f32.mrb[17].mxu1 }
 0x6a5   :  { %v1200_v41 = vadd.f32 %v3281_v54, %v1199_v37 }
 0x6a6   :  { %4298 = vtanh.f32 %v1205_v36  ;;  %v3291_v27 = vmul.f32 -1.442695, %v1205_v36 }
 0x6a7   :  { %4300 = vtanh.f32 %v1200_v41  ;;  %v3290_v25 = vmul.f32 -1.442695, %v1200_v41 }
 0x6ab   :  { %v3789_v42 = vpop.f32.mrb[18].mxu1 }
 0x6ac   :  { %v1215_v43 = vadd.f32 %v3789_v42, %v3281_v54  ;;  %v1209_v44 = vpop.f32.mrb[19].mxu1 }
 0x6ad   :  { %v1210_v45 = vadd.f32 %v3281_v54, %v1209_v44 }
 0x6ae   :  { %4302 = vtanh.f32 %v1215_v43  ;;  %v3293_v31 = vmul.f32 -1.442695, %v1215_v43 }
 0x6af   :  { %4304 = vtanh.f32 %v1210_v45  ;;  %v3292_v29 = vmul.f32 -1.442695, %v1210_v45 }
 0x6b0   :  { %v4299_v48 = vpop.eup %4298 }
 0x6b1   :  { %v4301_v7 = vpop.eup %4300  ;;  %1304 = vrot.lane.b32.xlu1 %v4299_v48, %s4516_s16 }
 0x6b2   :  { %1302 = vrot.lane.b32.xlu0 %v4301_v7, %s4516_s16 }
 0x6b3   :  { %v3792_v8 = vpop.f32.mrb[20].mxu1 }
 0x6b4   :  { %v1225_v57 = vadd.f32 %v3792_v8, %v3281_v54  ;;  %v1219_v60 = vpop.f32.mrb[21].mxu1 }
 0x6b5   :  { %v1220_v0 = vadd.f32 %v3281_v54, %v1219_v60 }
 0x6b6   :  { %4306 = vtanh.f32 %v1225_v57  ;;  %v3295_v40 = vmul.f32 -1.442695, %v1225_v57 }
 0x6b7   :  { %4308 = vtanh.f32 %v1220_v0  ;;  %v3294_v38 = vmul.f32 -1.442695, %v1220_v0 }
 0x6b8   :  { %v4303_v61 = vpop.eup %4302 }
 0x6b9   :  { %v4305_v18 = vpop.eup %4304  ;;  %1308 = vrot.lane.b32.xlu1 %v4303_v61, %s4516_s16 }
 0x6ba   :  { %1306 = vrot.lane.b32.xlu0 %v4305_v18, %s4516_s16 }
 0x6bb   :  { %v3795_v6 = vpop.f32.mrb[22].mxu1 }
 0x6bc   :  { %v1235_v9 = vadd.f32 %v3795_v6, %v3281_v54  ;;  %v1229_v10 = vpop.f32.mrb[23].mxu1 }
 0x6bd   :  { %v1230_v13 = vadd.f32 %v3281_v54, %v1229_v10 }
 0x6be   :  { %4310 = vtanh.f32 %v1235_v9  ;;  %v3297_v7 = vmul.f32 -1.442695, %v1235_v9 }
 0x6bf   :  { %4312 = vtanh.f32 %v1230_v13  ;;  %v3296_v48 = vmul.f32 -1.442695, %v1230_v13 }
 0x6c0   :  { %v4307_v14 = vpop.eup %4306  ;;  %4314 = vpow2.f32 %v3290_v25 }
 0x6c1   :  { %v4309_v47 = vpop.eup %4308  ;;  %1312 = vrot.lane.b32.xlu1 %v4307_v14, %s4516_s16  ;;  %4316 = vpow2.f32 %v3291_v27 }
 0x6c2   :  { %1310 = vrot.lane.b32.xlu0 %v4309_v47, %s4516_s16  ;;  %4318 = vpow2.f32 %v3292_v29 }
 0x6c3   :  { %4320 = vpow2.f32 %v3293_v31 }
 0x6c8   :  { %v4311_v22 = vpop.eup %4310 }
 0x6c9   :  { %v4313_v23 = vpop.eup %4312  ;;  %1316 = vrot.lane.b32.xlu1 %v4311_v22, %s4516_s16 }
 0x6ca   :  { %1314 = vrot.lane.b32.xlu0 %v4313_v23, %s4516_s16  ;;  %v4315_v54 = vpop.eup %4314 }
 0x6cb   :  { %v4317_v35 = vpop.eup %4316  ;;  %v1262_v37 = vadd.f32 1.0, %v4315_v54 }
 0x6cc   :  { %v1263_v63 = vadd.f32 1.0, %v4317_v35  ;;  %v4319_v42 = vpop.eup %4318 }
 0x6cd   :  { %4322 = vrcp.f32 %v1262_v37  ;;  %v4321_v44 = vpop.eup %4320  ;;  %v1264_v41 = vadd.f32 1.0, %v4319_v42 }
 0x6ce   :  { %4324 = vrcp.f32 %v1263_v63  ;;  %v1265_v36 = vadd.f32 1.0, %v4321_v44 }
 0x6cf   :  { %4326 = vpow2.f32 %v3294_v38 }
 0x6d0   :  { %4328 = vpow2.f32 %v3295_v40 }
 0x6d1   :  { %4330 = vrcp.f32 %v1264_v41 }
 0x6d2   :  { %4332 = vrcp.f32 %v1265_v36 }
 0x6d3   :  { %4334 = vpow2.f32 %v3296_v48 }
 0x6d4   :  { %4336 = vpow2.f32 %v3297_v7 }
 0x6d7   :  { %v4323_v45 = vpop.eup %4322 }
 0x6d8   :  { %v4325_v60 = vpop.eup %4324 }
 0x6d9   :  { %v4327_v57 = vpop.eup %4326 }
 0x6da   :  { %v4329_v18 = vpop.eup %4328  ;;  %v1266_v6 = vadd.f32 1.0, %v4327_v57 }
 0x6db   :  { %v1267_v10 = vadd.f32 1.0, %v4329_v18  ;;  %v4331_v9 = vpop.eup %4330  ;;  %v3317_v18 = vld [vmem:[%s5749_s2 + $0x118] sm:$0xff] }
 0x6dc   :  { %v4333_v47 = vpop.eup %4332  ;;  %4338 = vrcp.f32 %v1266_v6 }
 0x6dd   :  { %v4335_v23 = vpop.eup %4334  ;;  %4340 = vrcp.f32 %v1267_v10  ;;  %v3318_v10 = vld [vmem:[%s5749_s2 + $0x120] sm:$0xff] }
 0x6de   :  { %v4337_v27 = vpop.eup %4336  ;;  %v1268_v29 = vadd.f32 1.0, %v4335_v23  ;;  %v3303_v23 = vld [vmem:[%s5752_s5 + $0x2] ss:$0 sm:$0xff] }
 0x6df   :  { %v1269_v31 = vadd.f32 1.0, %v4337_v27  ;;  %v1010_v27 = vadd.f32 %v5023_v49, %v4847_v15 }
 0x6e0   :  { %4342 = vrcp.f32 %v1268_v29 }
 0x6e1   :  { %4344 = vrcp.f32 %v1269_v31 }
 0x6e6   :  { %v4339_v35 = vpop.eup %4338 }
 0x6e7   :  { %v4341_v63 = vpop.eup %4340 }
 0x6ea   :  { %v4343_v44 = vpop.eup %4342 }
 0x6eb   :  { %v4345_v36 = vpop.eup %4344 }
 0x723   :  { %v1305_v43 = vpop.permute.xlu1 %1304 }
 0x724   :  { %v1303_v8 = vpop.permute.xlu0 %1302  ;;  %v1327_v0 = vmul.f32 %v4325_v60, %v1305_v43  ;;  %v3312_v43 = vld [vmem:[%s5749_s2 + $0xf0] sm:$0xff] }
 0x725   :  { %v1326_v61 = vmul.f32 %v4323_v45, %v1303_v8  ;;  %v3313_v45 = vld [vmem:[%s5749_s2 + $0xf8] sm:$0xff]  ;;  %v3314_v8 = vld [vmem:[%s5749_s2 + $0x100] sm:$0xff] }
 0x726   :  { %v4096_v60 = vpack.c.bf16 %v3313_v45, %v3312_v43 }
 0x727   :  { %3804 = vmatprep.mubr.msk.f32.mxu0 %vm141_vm1, %v1326_v61  ;;  %v3315_v61 = vld [vmem:[%s5749_s2 + $0x108] sm:$0xff] }
 0x728   :  { %3805 = vmatmul.mubr.msk.f32.vlgmr.msra.gmra.mrb[16].mxu0 %vm141_vm1, %v1327_v0  ;;  %v4100_v57 = vpack.c.bf16 %v3315_v61, %v3314_v8  ;;  %v3316_v0 = vld [vmem:[%s5749_s2 + $0x110] sm:$0xff]  ;;  %4097 = vmatprep.subr.bf16.mxu1 %v4096_v60 }
 0x729   :  { %4099 = vmatpush3.bf16.msra.mxu1 %v4096_v60  ;;  %v4104_v6 = vpack.c.bf16 %v3317_v18, %v3316_v0 }
 0x72a   :  { %4101 = vmatprep.subr.bf16.mxu1 %v4100_v57 }
 0x72b   :  { %v1309_v13 = vpop.permute.xlu1 %1308 }
 0x72c   :  { %v1307_v14 = vpop.permute.xlu0 %1306  ;;  %v1329_v25 = vmul.f32 %v4333_v47, %v1309_v13  ;;  %v3319_v13 = vld [vmem:[%s5749_s2 + $0x128] sm:$0xff]  ;;  %v3321_v47 = vld [vmem:[%s5749_s2 + $0x138] sm:$0xff] }
 0x72d   :  { %v1328_v22 = vmul.f32 %v4331_v9, %v1307_v14  ;;  %4103 = vmatpush3.bf16.msra.mxu1 %v4100_v57  ;;  %v4108_v9 = vpack.c.bf16 %v3319_v13, %v3318_v10  ;;  %v3320_v14 = vld [vmem:[%s5749_s2 + $0x130] sm:$0xff] }
 0x72e   :  { %4105 = vmatprep.subr.bf16.mxu1 %v4104_v6 }
 0x72f   :  { %3807 = vmatprep.mubr.msk.f32.mxu0 %vm141_vm1, %v1328_v22  ;;  %v4112_v22 = vpack.c.bf16 %v3321_v47, %v3320_v14 }
 0x730   :  { %3808 = vmatmul.mubr.msk.f32.gmra.mrb[18].mxu0 %vm141_vm1, %v1329_v25 }
 0x731   :  { %4107 = vmatpush3.bf16.msra.mxu1 %v4104_v6 }
 0x732   :  { %4109 = vmatprep.subr.bf16.mxu1 %v4108_v9 }
 0x733   :  { %v1313_v54 = vpop.permute.xlu1 %1312 }
 0x734   :  { %v1311_v37 = vpop.permute.xlu0 %1310  ;;  %v1331_v40 = vmul.f32 %v4341_v63, %v1313_v54  ;;  %v1009_v54 = vadd.f32 %v5025_v52, %v4849_v17  ;;  %v1012_v52 = vadd.f32 %v5039_v1, %v4863_v24 }
 0x735   :  { %v1330_v38 = vmul.f32 %v4339_v35, %v1311_v37  ;;  %4111 = vmatpush3.bf16.msra.mxu1 %v4108_v9 }
 0x736   :  { %4113 = vmatprep.subr.bf16.mxu1 %v4112_v22 }
 0x737   :  { %3810 = vmatprep.mubr.msk.f32.mxu0 %vm141_vm1, %v1330_v38 }
 0x738   :  { %3811 = vmatmul.mubr.msk.f32.gmra.mrb[20].mxu0 %vm141_vm1, %v1331_v40 }
 0x739   :  { %4115 = vmatpush3.bf16.msra.mxu1 %v4112_v22 }
 0x73b   :  { %v1317_v42 = vpop.permute.xlu1 %1316 }
 0x73c   :  { %v1315_v41 = vpop.permute.xlu0 %1314  ;;  %v1333_v7 = vmul.f32 %v4345_v36, %v1317_v42 }
 0x73d   :  { %v1332_v48 = vmul.f32 %v4343_v44, %v1315_v41 }
 0x73f   :  { %3813 = vmatprep.mubr.msk.f32.mxu0 %vm141_vm1, %v1332_v48 }
 0x740   :  { %3814 = vmatmul.mubr.msk.f32.gmra.mrb[22].mxu0 %vm141_vm1, %v1333_v7 }
 0x7fb   :  { %v3806_v25 = vpop.f32.mrb[16].mxu0 }
 0x7fc   :  { %v1443_v29 = vadd.f32 %v3806_v25, %v3303_v23  ;;  %v1437_v31 = vpop.f32.mrb[17].mxu0 }
 0x7fd   :  { %v1438_v35 = vadd.f32 %v3303_v23, %v1437_v31 }
 0x7fe   :  { %v5203_v37 = vadd.f32 %v1443_v29, %v1010_v27  ;;  %v5206_v63 = vadd.f32 %v1443_v29, %v5029_v53 }
 0x7ff   :  { %v5208_v38 = vadd.f32 %v1438_v35, %v1009_v54  ;;  %v5211_v40 = vadd.f32 %v1438_v35, %v5033_v56  ;;  %v1011_v56 = vadd.f32 %v5042_v2, %v4866_v51  ;;  %v1014_v2 = vadd.f32 %v5058_v16, %v4882_v32 }
 0x800   :  { %v1497_v42 = vrot.slane %v5206_v63, 7 }
 0x801   :  { %v1496_v15 = vrot.slane %v5211_v40, 7 }
 0x803   :  { %1503 = vrot.lane.b32.xlu0 %v1496_v15, %s4516_s16  ;;  %v3809_v49 = vpop.f32.mrb[18].mxu0  ;;  %v1498_v17 = vsel %vm56_vm0, %v1496_v15, %v1497_v42 }
 0x804   :  { %v1453_v44 = vadd.f32 %v3809_v49, %v3303_v23  ;;  %1505 = vrot.lane.b32.xlu1 %v1498_v17, %s4516_s16  ;;  %v1447_v53 = vpop.f32.mrb[19].mxu0 }
 0x805   :  { %v1448_v41 = vadd.f32 %v3303_v23, %v1447_v53 }
 0x806   :  { %v5222_v36 = vadd.f32 %v1453_v44, %v1012_v52  ;;  %v5225_v48 = vadd.f32 %v1453_v44, %v5046_v19 }
 0x807   :  { %v5227_v7 = vadd.f32 %v1448_v41, %v1011_v56  ;;  %v5230_v43 = vadd.f32 %v1448_v41, %v5050_v5  ;;  %v1013_v5 = vadd.f32 %v5060_v20, %v4884_v33  ;;  %v1016_v20 = vadd.f32 %v5074_v28, %v4898_v39 }
 0x808   :  { %v1501_v24 = vrot.slane %v5225_v48, 7 }
 0x809   :  { %v1499_v1 = vrot.slane %v5230_v43, 7 }
 0x80b   :  { %v1502_v45 = vsel %vm56_vm0, %v1499_v1, %v1501_v24  ;;  %v1500_v8 = vsel %vm56_vm0, %v1497_v42, %v1499_v1  ;;  %v3812_v51 = vpop.f32.mrb[20].mxu0 }
 0x80c   :  { %1509 = vrot.lane.b32.xlu1 %v1502_v45, %s4516_s16  ;;  %1507 = vrot.lane.b32.xlu0 %v1500_v8, %s4516_s16  ;;  %v1463_v19 = vadd.f32 %v3812_v51, %v3303_v23  ;;  %v1457_v60 = vpop.f32.mrb[21].mxu0 }
 0x80d   :  { %v1458_v61 = vadd.f32 %v3303_v23, %v1457_v60 }
 0x80e   :  { %v5242_v57 = vadd.f32 %v1463_v19, %v1014_v2  ;;  %v5245_v0 = vadd.f32 %v1463_v19, %v5064_v26 }
 0x80f   :  { %v5247_v18 = vadd.f32 %v1458_v61, %v1013_v5  ;;  %v5250_v6 = vadd.f32 %v1458_v61, %v5068_v21  ;;  %v1015_v21 = vadd.f32 %v5077_v55, %v4901_v62  ;;  %v3340_v61 = vld [vmem:[%s5751_s4 + $0x60] sm:$0xff] }
 0x810   :  { %v1520_v10 = vrot.slane %v5245_v0, 7 }
 0x811   :  { %v1519_v32 = vrot.slane %v5250_v6, 7 }
 0x813   :  { %1526 = vrot.lane.b32.xlu0 %v1519_v32, %s4516_s16  ;;  %v3815_v16 = vpop.f32.mrb[22].mxu0  ;;  %v1521_v33 = vsel %vm56_vm0, %v1519_v32, %v1520_v10 }
 0x814   :  { %v1473_v13 = vadd.f32 %v3815_v16, %v3303_v23  ;;  %1528 = vrot.lane.b32.xlu1 %v1521_v33, %s4516_s16  ;;  %v1467_v26 = vpop.f32.mrb[23].mxu0  ;;  %v3323_v16 = vld [vmem:[%s5750_s3 + $0x3] ss:$0 sm:$0xff] }
 0x815   :  { %v1468_v9 = vadd.f32 %v3303_v23, %v1467_v26  ;;  %v3342_v26 = vld [vmem:[%s5751_s4 + $0x70] sm:$0xff] }
 0x816   :  { %v5261_v14 = vadd.f32 %v1473_v13, %v1016_v20  ;;  %v5264_v47 = vadd.f32 %v1473_v13, %v5081_v34 }
 0x817   :  { %v5266_v22 = vadd.f32 %v1468_v9, %v1015_v21  ;;  %v5269_v25 = vadd.f32 %v1468_v9, %v5085_v30  ;;  %v3343_v21 = vld [vmem:[%s5751_s4 + $0x78] sm:$0xff] }
 0x818   :  { %v1524_v39 = vrot.slane %v5264_v47, 7 }
 0x819   :  { %v1522_v28 = vrot.slane %v5269_v25, 7 }
 0x81b   :  { %v1525_v27 = vsel %vm56_vm0, %v1522_v28, %v1524_v39  ;;  %v1523_v29 = vsel %vm56_vm0, %v1520_v10, %v1522_v28  ;;  %v3341_v10 = vld [vmem:[%s5751_s4 + $0x68] sm:$0xff]  ;;  %v4120_v39 = vpack.c.bf16 %v3343_v21, %v3342_v26 }
 0x81c   :  { %1532 = vrot.lane.b32.xlu1 %v1525_v27, %s4516_s16  ;;  %1530 = vrot.lane.b32.xlu0 %v1523_v29, %s4516_s16  ;;  %v4116_v32 = vpack.c.bf16 %v3341_v10, %v3340_v61 }
 0x81e   :  { %4117 = vmatprep.subr.bf16.mxu0 %v4116_v32 }
 0x81f   :  { %4119 = vmatpush3.bf16.msra.mxu0 %v4116_v32 }
 0x820   :  { %4121 = vmatprep.subr.bf16.mxu0 %v4120_v39 }
 0x823   :  { %4123 = vmatpush3.bf16.msra.mxu0 %v4120_v39 }
 0x875   :  { %v1504_v62 = vpop.permute.xlu0 %1503 }
 0x876   :  { %v1538_v55 = vsel %vm56_vm0, 0.0, %v1504_v62  ;;  %v1506_v34 = vpop.permute.xlu1 %1505 }
 0x877   :  { %v1540_v30 = vsel %vm141_vm1, %v1538_v55, %v5211_v40  ;;  %v1541_v23 = vsel %vm141_vm1, %v1506_v34, %v5206_v63 }
 0x878   :  { %v1549_v31 = vsel %vm150_vm2, %v1541_v23, %v4711_v50  ;;  %v1548_v54 = vsel %vm150_vm2, %v1540_v30, %v4702_v46 }
 0x879   :  { %3836 = vmatprep.mubr.msk.f32.mxu1 %vm176_vm3, %v1548_v54 }
 0x87a   :  { %3837 = vmatmul.mubr.msk.f32.vlgmr.msra.gmra.mrb[24].mxu1 %vm176_vm3, %v1549_v31 }
 0x87e   :  { %v1508_v35 = vpop.permute.xlu0 %1507  ;;  %v1510_v42 = vpop.permute.xlu1 %1509 }
 0x87f   :  { %v1542_v15 = vsel %vm141_vm1, %v1508_v35, %v5230_v43  ;;  %v1543_v49 = vsel %vm141_vm1, %v1510_v42, %v5225_v48 }
 0x880   :  { %v1550_v17 = vsel %vm150_vm2, %v1542_v15, %v4733_v59  ;;  %v1551_v52 = vsel %vm150_vm2, %v1543_v49, %v4731_v58 }
 0x881   :  { %3839 = vmatprep.mubr.msk.f32.mxu1 %vm176_vm3, %v1550_v17 }
 0x882   :  { %3840 = vmatmul.mubr.msk.f32.gmra.mrb[26].mxu1 %vm176_vm3, %v1551_v52 }
 0x885   :  { %v1527_v44 = vpop.permute.xlu0 %1526 }
 0x886   :  { %v1539_v53 = vsel %vm56_vm0, 0.0, %v1527_v44  ;;  %v1529_v56 = vpop.permute.xlu1 %1528 }
 0x887   :  { %v1544_v41 = vsel %vm141_vm1, %v1539_v53, %v5250_v6  ;;  %v1545_v24 = vsel %vm141_vm1, %v1529_v56, %v5245_v0 }
 0x888   :  { %v1552_v1 = vsel %vm150_vm2, %v1544_v41, %v4755_v4  ;;  %v1553_v45 = vsel %vm150_vm2, %v1545_v24, %v4753_v3 }
 0x889   :  { %3842 = vmatprep.mubr.msk.f32.mxu1 %vm176_vm3, %v1552_v1 }
 0x88a   :  { %3843 = vmatmul.mubr.msk.f32.gmra.mrb[28].mxu1 %vm176_vm3, %v1553_v45 }
 0x88e   :  { %v1531_v8 = vpop.permute.xlu0 %1530  ;;  %v1533_v51 = vpop.permute.xlu1 %1532 }
 0x88f   :  { %v1546_v2 = vsel %vm141_vm1, %v1531_v8, %v5269_v25  ;;  %v1547_v19 = vsel %vm141_vm1, %v1533_v51, %v5264_v47 }
 0x890   :  { %v1554_v60 = vsel %vm150_vm2, %v1546_v2, %v4775_v12  ;;  %v1555_v5 = vsel %vm150_vm2, %v1547_v19, %v4773_v11 }
 0x891   :  { %3845 = vmatprep.mubr.msk.f32.mxu1 %vm176_vm3, %v1554_v60 }
 0x892   :  { %3846 = vmatmul.mubr.msk.f32.gmra.mrb[30].mxu1 %vm176_vm3, %v1555_v5 }
 0x94d   :  { %v3838_v33 = vpop.f32.mrb[24].mxu1 }
 0x94e   :  { %v1671_v20 = vadd.f32 %v3838_v33, %v3323_v16  ;;  %v1665_v13 = vpop.f32.mrb[25].mxu1 }
 0x94f   :  { %v1666_v9 = vadd.f32 %v3323_v16, %v1665_v13 }
 0x950   :  { %4346 = vtanh.f32 %v1671_v20  ;;  %v3333_v1 = vmul.f32 -1.442695, %v1671_v20 }
 0x951   :  { %4348 = vtanh.f32 %v1666_v9  ;;  %v3332_v24 = vmul.f32 -1.442695, %v1666_v9 }
 0x955   :  { %v3841_v28 = vpop.f32.mrb[26].mxu1 }
 0x956   :  { %v1681_v27 = vadd.f32 %v3841_v28, %v3323_v16  ;;  %v1675_v29 = vpop.f32.mrb[27].mxu1 }
 0x957   :  { %v1676_v62 = vadd.f32 %v3323_v16, %v1675_v29 }
 0x958   :  { %4350 = vtanh.f32 %v1681_v27  ;;  %v3335_v8 = vmul.f32 -1.442695, %v1681_v27 }
 0x959   :  { %4352 = vtanh.f32 %v1676_v62  ;;  %v3334_v45 = vmul.f32 -1.442695, %v1676_v62 }
 0x95a   :  { %v4347_v55 = vpop.eup %4346 }
 0x95b   :  { %v4349_v34 = vpop.eup %4348  ;;  %1770 = vrot.lane.b32.xlu1 %v4347_v55, %s4516_s16 }
 0x95c   :  { %1768 = vrot.lane.b32.xlu0 %v4349_v34, %s4516_s16 }
 0x95d   :  { %v3844_v30 = vpop.f32.mrb[28].mxu1 }
 0x95e   :  { %v1691_v23 = vadd.f32 %v3844_v30, %v3323_v16  ;;  %v1685_v31 = vpop.f32.mrb[29].mxu1 }
 0x95f   :  { %v1686_v35 = vadd.f32 %v3323_v16, %v1685_v31 }
 0x960   :  { %4354 = vtanh.f32 %v1691_v23  ;;  %v3337_v61 = vmul.f32 -1.442695, %v1691_v23 }
 0x961   :  { %4356 = vtanh.f32 %v1686_v35  ;;  %v3336_v5 = vmul.f32 -1.442695, %v1686_v35 }
 0x962   :  { %v4351_v54 = vpop.eup %4350 }
 0x963   :  { %v4353_v42 = vpop.eup %4352  ;;  %1774 = vrot.lane.b32.xlu1 %v4351_v54, %s4516_s16 }
 0x964   :  { %1772 = vrot.lane.b32.xlu0 %v4353_v42, %s4516_s16 }
 0x965   :  { %v3847_v15 = vpop.f32.mrb[30].mxu1 }
 0x966   :  { %v1701_v49 = vadd.f32 %v3847_v15, %v3323_v16  ;;  %v1695_v17 = vpop.f32.mrb[31].mxu1 }
 0x967   :  { %v1696_v52 = vadd.f32 %v3323_v16, %v1695_v17 }
 0x968   :  { %4358 = vtanh.f32 %v1701_v49  ;;  %v3339_v13 = vmul.f32 -1.442695, %v1701_v49 }
 0x969   :  { %4360 = vtanh.f32 %v1696_v52  ;;  %v3338_v20 = vmul.f32 -1.442695, %v1696_v52 }
 0x96a   :  { %v4355_v44 = vpop.eup %4354  ;;  %4362 = vpow2.f32 %v3332_v24 }
 0x96b   :  { %v4357_v53 = vpop.eup %4356  ;;  %1778 = vrot.lane.b32.xlu1 %v4355_v44, %s4516_s16  ;;  %4364 = vpow2.f32 %v3333_v1 }
 0x96c   :  { %1776 = vrot.lane.b32.xlu0 %v4357_v53, %s4516_s16  ;;  %4366 = vpow2.f32 %v3334_v45 }
 0x96d   :  { %4368 = vpow2.f32 %v3335_v8 }
 0x972   :  { %v4359_v56 = vpop.eup %4358 }
 0x973   :  { %v4361_v41 = vpop.eup %4360  ;;  %1782 = vrot.lane.b32.xlu1 %v4359_v56, %s4516_s16 }
 0x974   :  { %1780 = vrot.lane.b32.xlu0 %v4361_v41, %s4516_s16  ;;  %v4363_v51 = vpop.eup %4362 }
 0x975   :  { %v4365_v2 = vpop.eup %4364  ;;  %v1728_v19 = vadd.f32 1.0, %v4363_v51 }
 0x976   :  { %v1729_v60 = vadd.f32 1.0, %v4365_v2  ;;  %v4367_v10 = vpop.eup %4366 }
 0x977   :  { %4370 = vrcp.f32 %v1728_v19  ;;  %v4369_v32 = vpop.eup %4368  ;;  %v1730_v16 = vadd.f32 1.0, %v4367_v10  ;;  %v3356_v10 = vld [vmem:[%s5749_s2 + $0x150] sm:$0xff] }
 0x978   :  { %4372 = vrcp.f32 %v1729_v60  ;;  %v1731_v33 = vadd.f32 1.0, %v4369_v32 }
 0x979   :  { %4374 = vpow2.f32 %v3336_v5  ;;  %v3354_v5 = vld [vmem:[%s5749_s2 + $0x140] sm:$0xff] }
 0x97a   :  { %4376 = vpow2.f32 %v3337_v61  ;;  %v3355_v61 = vld [vmem:[%s5749_s2 + $0x148] sm:$0xff] }
 0x97b   :  { %4378 = vrcp.f32 %v1730_v16  ;;  %v4124_v32 = vpack.c.bf16 %v3355_v61, %v3354_v5  ;;  %v3357_v16 = vld [vmem:[%s5749_s2 + $0x158] sm:$0xff] }
 0x97c   :  { %4380 = vrcp.f32 %v1731_v33  ;;  %v4128_v33 = vpack.c.bf16 %v3357_v16, %v3356_v10 }
 0x97d   :  { %4382 = vpow2.f32 %v3338_v20  ;;  %v3358_v20 = vld [vmem:[%s5749_s2 + $0x160] sm:$0xff]  ;;  %4125 = vmatprep.subr.bf16.mxu0 %v4124_v32 }
 0x97e   :  { %4384 = vpow2.f32 %v3339_v13  ;;  %v3359_v13 = vld [vmem:[%s5749_s2 + $0x168] sm:$0xff] }
 0x981   :  { %v4371_v21 = vpop.eup %4370 }
 0x982   :  { %v4373_v39 = vpop.eup %4372 }
 0x983   :  { %v4375_v27 = vpop.eup %4374 }
 0x984   :  { %v4377_v62 = vpop.eup %4376  ;;  %v1732_v55 = vadd.f32 1.0, %v4375_v27  ;;  %v3363_v27 = vld [vmem:[%s5749_s2 + $0x188] sm:$0xff] }
 0x985   :  { %v1733_v34 = vadd.f32 1.0, %v4377_v62  ;;  %v4379_v23 = vpop.eup %4378  ;;  %v3345_v62 = vld [vmem:[%s5752_s5 + $0x3] ss:$0 sm:$0xff] }
 0x986   :  { %v4381_v54 = vpop.eup %4380  ;;  %4386 = vrcp.f32 %v1732_v55 }
 0x987   :  { %v4383_v42 = vpop.eup %4382  ;;  %4388 = vrcp.f32 %v1733_v34 }
 0x988   :  { %v4385_v49 = vpop.eup %4384  ;;  %v1734_v17 = vadd.f32 1.0, %v4383_v42 }
 0x989   :  { %v1735_v52 = vadd.f32 1.0, %v4385_v49 }
 0x98a   :  { %4390 = vrcp.f32 %v1734_v17 }
 0x98b   :  { %4392 = vrcp.f32 %v1735_v52 }
 0x990   :  { %v4387_v53 = vpop.eup %4386 }
 0x991   :  { %v4389_v41 = vpop.eup %4388 }
 0x994   :  { %v4391_v8 = vpop.eup %4390 }
 0x995   :  { %v4393_v2 = vpop.eup %4392 }
 0x9cd   :  { %v1771_v26 = vpop.permute.xlu1 %1770 }
 0x9ce   :  { %v1769_v9 = vpop.permute.xlu0 %1768  ;;  %v1793_v29 = vmul.f32 %v4373_v39, %v1771_v26  ;;  %v4132_v26 = vpack.c.bf16 %v3359_v13, %v3358_v20 }
 0x9cf   :  { %v1792_v28 = vmul.f32 %v4371_v21, %v1769_v9  ;;  %v3360_v21 = vld [vmem:[%s5749_s2 + $0x170] sm:$0xff]  ;;  %v3361_v9 = vld [vmem:[%s5749_s2 + $0x178] sm:$0xff] }
 0x9d0   :  { %v4136_v39 = vpack.c.bf16 %v3361_v9, %v3360_v21 }
 0x9d1   :  { %3856 = vmatprep.mubr.msk.f32.mxu0 %vm141_vm1, %v1792_v28  ;;  %v3362_v28 = vld [vmem:[%s5749_s2 + $0x180] sm:$0xff] }
 0x9d2   :  { %3857 = vmatmul.mubr.msk.f32.vlgmr.msra.gmra.mrb[24].mxu0 %vm141_vm1, %v1793_v29  ;;  %v4140_v29 = vpack.c.bf16 %v3363_v27, %v3362_v28 }
 0x9d3   :  { %4127 = vmatpush3.bf16.msra.mxu0 %v4124_v32 }
 0x9d4   :  { %4129 = vmatprep.subr.bf16.mxu0 %v4128_v33 }
 0x9d5   :  { %v1775_v30 = vpop.permute.xlu1 %1774 }
 0x9d6   :  { %v1773_v31 = vpop.permute.xlu0 %1772  ;;  %v1795_v15 = vmul.f32 %v4381_v54, %v1775_v30 }
 0x9d7   :  { %v1794_v35 = vmul.f32 %v4379_v23, %v1773_v31  ;;  %4131 = vmatpush3.bf16.msra.mxu0 %v4128_v33 }
 0x9d8   :  { %4133 = vmatprep.subr.bf16.mxu0 %v4132_v26 }
 0x9d9   :  { %3859 = vmatprep.mubr.msk.f32.mxu0 %vm141_vm1, %v1794_v35 }
 0x9da   :  { %3860 = vmatmul.mubr.msk.f32.gmra.mrb[26].mxu0 %vm141_vm1, %v1795_v15 }
 0x9db   :  { %4135 = vmatpush3.bf16.msra.mxu0 %v4132_v26 }
 0x9dc   :  { %4137 = vmatprep.subr.bf16.mxu0 %v4136_v39 }
 0x9dd   :  { %v1779_v44 = vpop.permute.xlu1 %1778 }
 0x9de   :  { %v1777_v56 = vpop.permute.xlu0 %1776  ;;  %v1797_v1 = vmul.f32 %v4389_v41, %v1779_v44 }
 0x9df   :  { %v1796_v24 = vmul.f32 %v4387_v53, %v1777_v56  ;;  %4139 = vmatpush3.bf16.msra.mxu0 %v4136_v39 }
 0x9e0   :  { %4141 = vmatprep.subr.bf16.mxu0 %v4140_v29 }
 0x9e1   :  { %3862 = vmatprep.mubr.msk.f32.mxu0 %vm141_vm1, %v1796_v24 }
 0x9e2   :  { %3863 = vmatmul.mubr.msk.f32.gmra.mrb[28].mxu0 %vm141_vm1, %v1797_v1 }
 0x9e3   :  { %4143 = vmatpush3.bf16.msra.mxu0 %v4140_v29 }
 0x9e5   :  { %v1783_v45 = vpop.permute.xlu1 %1782 }
 0x9e6   :  { %v1781_v51 = vpop.permute.xlu0 %1780  ;;  %v1799_v60 = vmul.f32 %v4393_v2, %v1783_v45 }
 0x9e7   :  { %v1798_v19 = vmul.f32 %v4391_v8, %v1781_v51 }
 0x9e9   :  { %3865 = vmatprep.mubr.msk.f32.mxu0 %vm141_vm1, %v1798_v19 }
 0x9ea   :  { %3866 = vmatmul.mubr.msk.f32.gmra.mrb[30].mxu0 %vm141_vm1, %v1799_v60 }
 0xaa5   :  { %v3858_v55 = vpop.f32.mrb[24].mxu0 }
 0xaa6   :  { %v1909_v34 = vadd.f32 %v3858_v55, %v3345_v62  ;;  %v1903_v30 = vpop.f32.mrb[25].mxu0 }
 0xaa7   :  { %v1904_v23 = vadd.f32 %v3345_v62, %v1903_v30 }
 0xaa8   :  { %v5384_v31 = vadd.f32 %v1909_v34, %v5203_v37  ;;  %v5387_v54 = vadd.f32 %v1909_v34, %v5206_v63 }
 0xaa9   :  { %v5390_v35 = vadd.f32 %v1904_v23, %v5208_v38  ;;  %v5393_v42 = vadd.f32 %v1904_v23, %v5211_v40 }
 0xaaa   :  { %v1963_v15 = vrot.slane %v5387_v54, 6 }
 0xaab   :  { %v1962_v49 = vrot.slane %v5393_v42, 6 }
 0xaad   :  { %1969 = vrot.lane.b32.xlu0 %v1962_v49, %s4516_s16  ;;  %v3861_v17 = vpop.f32.mrb[26].mxu0  ;;  %v1964_v52 = vsel %vm562_vm4, %v1962_v49, %v1963_v15 }
 0xaae   :  { %v1919_v37 = vadd.f32 %v3861_v17, %v3345_v62  ;;  %1971 = vrot.lane.b32.xlu1 %v1964_v52, %s4516_s16  ;;  %v1913_v63 = vpop.f32.mrb[27].mxu0 }
 0xaaf   :  { %v1914_v44 = vadd.f32 %v3345_v62, %v1913_v63 }
 0xab0   :  { %v5401_v38 = vadd.f32 %v1919_v37, %v5222_v36  ;;  %v5404_v40 = vadd.f32 %v1919_v37, %v5225_v48 }
 0xab1   :  { %v5407_v53 = vadd.f32 %v1914_v44, %v5227_v7  ;;  %v5410_v56 = vadd.f32 %v1914_v44, %v5230_v43 }
 0xab2   :  { %v1967_v41 = vrot.slane %v5404_v40, 6 }
 0xab3   :  { %v1965_v24 = vrot.slane %v5410_v56, 6 }
 0xab5   :  { %v1968_v1 = vsel %vm562_vm4, %v1965_v24, %v1967_v41  ;;  %v1966_v45 = vsel %vm562_vm4, %v1963_v15, %v1965_v24  ;;  %v3864_v36 = vpop.f32.mrb[28].mxu0 }
 0xab6   :  { %1975 = vrot.lane.b32.xlu1 %v1968_v1, %s4516_s16  ;;  %1973 = vrot.lane.b32.xlu0 %v1966_v45, %s4516_s16  ;;  %v1929_v48 = vadd.f32 %v3864_v36, %v3345_v62  ;;  %v1923_v8 = vpop.f32.mrb[29].mxu0 }
 0xab7   :  { %v1924_v7 = vadd.f32 %v3345_v62, %v1923_v8  ;;  %v3383_v8 = vld [vmem:[%s5751_s4 + $0x88] sm:$0xff] }
 0xab8   :  { %v5419_v51 = vadd.f32 %v1929_v48, %v5242_v57  ;;  %v5422_v43 = vadd.f32 %v1929_v48, %v5245_v0  ;;  %v3382_v48 = vld [vmem:[%s5751_s4 + $0x80] sm:$0xff] }
 0xab9   :  { %v5425_v2 = vadd.f32 %v1924_v7, %v5247_v18  ;;  %v5428_v19 = vadd.f32 %v1924_v7, %v5250_v6  ;;  %v4144_v7 = vpack.c.bf16 %v3383_v8, %v3382_v48 }
 0xaba   :  { %v1986_v60 = vrot.slane %v5422_v43, 6 }
 0xabb   :  { %v1985_v5 = vrot.slane %v5428_v19, 6  ;;  %4145 = vmatprep.subr.bf16.mxu1 %v4144_v7 }
 0xabc   :  { %4147 = vmatpush3.bf16.msra.mxu1 %v4144_v7 }
 0xabd   :  { %1992 = vrot.lane.b32.xlu0 %v1985_v5, %s4516_s16  ;;  %v3867_v61 = vpop.f32.mrb[30].mxu0  ;;  %v1987_v10 = vsel %vm562_vm4, %v1985_v5, %v1986_v60 }
 0xabe   :  { %v1939_v57 = vadd.f32 %v3867_v61, %v3345_v62  ;;  %1994 = vrot.lane.b32.xlu1 %v1987_v10, %s4516_s16  ;;  %v1933_v0 = vpop.f32.mrb[31].mxu0 }
 0xabf   :  { %v1934_v32 = vadd.f32 %v3345_v62, %v1933_v0  ;;  %v3385_v0 = vld [vmem:[%s5751_s4 + $0x98] sm:$0xff] }
 0xac0   :  { %v5436_v18 = vadd.f32 %v1939_v57, %v5261_v14  ;;  %v5439_v6 = vadd.f32 %v1939_v57, %v5264_v47  ;;  %v3384_v57 = vld [vmem:[%s5751_s4 + $0x90] sm:$0xff] }
 0xac1   :  { %v5442_v16 = vadd.f32 %v1934_v32, %v5266_v22  ;;  %v5445_v33 = vadd.f32 %v1934_v32, %v5269_v25 }
 0xac2   :  { %v1990_v20 = vrot.slane %v5439_v6, 6 }
 0xac3   :  { %v1988_v13 = vrot.slane %v5445_v33, 6 }
 0xac5   :  { %v1991_v26 = vsel %vm562_vm4, %v1988_v13, %v1990_v20  ;;  %v1989_v21 = vsel %vm562_vm4, %v1986_v60, %v1988_v13  ;;  %v3365_v60 = vld [vmem:[%s5750_s3 + $0x4] ss:$0 sm:$0xff]  ;;  %v4148_v20 = vpack.c.bf16 %v3385_v0, %v3384_v57 }
 0xac6   :  { %1998 = vrot.lane.b32.xlu1 %v1991_v26, %s4516_s16  ;;  %1996 = vrot.lane.b32.xlu0 %v1989_v21, %s4516_s16 }
 0xac7   :  { %4149 = vmatprep.subr.bf16.mxu1 %v4148_v20 }
 0xac8   :  { %4151 = vmatpush3.bf16.msra.mxu1 %v4148_v20 }
 0xb1f   :  { %v1970_v14 = vpop.permute.xlu0 %1969 }
 0xb20   :  { %v2004_v47 = vsel %vm562_vm4, 0.0, %v1970_v14  ;;  %v1972_v22 = vpop.permute.xlu1 %1971 }
 0xb21   :  { %v2006_v25 = vsel %vm141_vm1, %v2004_v47, %v5393_v42  ;;  %v2007_v9 = vsel %vm141_vm1, %v1972_v22, %v5387_v54 }
 0xb22   :  { %v2015_v39 = vsel %vm150_vm2, %v2007_v9, %v4711_v50  ;;  %v2014_v28 = vsel %vm150_vm2, %v2006_v25, %v4702_v46 }
 0xb23   :  { %3888 = vmatprep.mubr.msk.f32.mxu0 %vm176_vm3, %v2014_v28 }
 0xb24   :  { %3889 = vmatmul.mubr.msk.f32.vlgmr.msra.gmra.mrb[32].mxu0 %vm176_vm3, %v2015_v39 }
 0xb28   :  { %v1974_v27 = vpop.permute.xlu0 %1973  ;;  %v1976_v29 = vpop.permute.xlu1 %1975 }
 0xb29   :  { %v2008_v62 = vsel %vm141_vm1, %v1974_v27, %v5410_v56  ;;  %v2009_v55 = vsel %vm141_vm1, %v1976_v29, %v5404_v40 }
 0xb2a   :  { %v2016_v34 = vsel %vm150_vm2, %v2008_v62, %v4733_v59  ;;  %v2017_v30 = vsel %vm150_vm2, %v2009_v55, %v4731_v58 }
 0xb2b   :  { %3891 = vmatprep.mubr.msk.f32.mxu0 %vm176_vm3, %v2016_v34 }
 0xb2c   :  { %3892 = vmatmul.mubr.msk.f32.gmra.mrb[34].mxu0 %vm176_vm3, %v2017_v30 }
 0xb2f   :  { %v1993_v23 = vpop.permute.xlu0 %1992 }
 0xb30   :  { %v2005_v15 = vsel %vm562_vm4, 0.0, %v1993_v23  ;;  %v1995_v49 = vpop.permute.xlu1 %1994 }
 0xb31   :  { %v2010_v17 = vsel %vm141_vm1, %v2005_v15, %v5428_v19  ;;  %v2011_v52 = vsel %vm141_vm1, %v1995_v49, %v5422_v43 }
 0xb32   :  { %v2018_v37 = vsel %vm150_vm2, %v2010_v17, %v4755_v4  ;;  %v2019_v63 = vsel %vm150_vm2, %v2011_v52, %v4753_v3 }
 0xb33   :  { %3894 = vmatprep.mubr.msk.f32.mxu0 %vm176_vm3, %v2018_v37 }
 0xb34   :  { %3895 = vmatmul.mubr.msk.f32.gmra.mrb[36].mxu0 %vm176_vm3, %v2019_v63 }
 0xb38   :  { %v1997_v44 = vpop.permute.xlu0 %1996  ;;  %v1999_v41 = vpop.permute.xlu1 %1998 }
 0xb39   :  { %v2012_v24 = vsel %vm141_vm1, %v1997_v44, %v5445_v33  ;;  %v2013_v1 = vsel %vm141_vm1, %v1999_v41, %v5439_v6 }
 0xb3a   :  { %v2020_v45 = vsel %vm150_vm2, %v2012_v24, %v4775_v12  ;;  %v2021_v36 = vsel %vm150_vm2, %v2013_v1, %v4773_v11 }
 0xb3b   :  { %3897 = vmatprep.mubr.msk.f32.mxu0 %vm176_vm3, %v2020_v45 }
 0xb3c   :  { %3898 = vmatmul.mubr.msk.f32.gmra.mrb[38].mxu0 %vm176_vm3, %v2021_v36 }
 0xbf7   :  { %v3890_v5 = vpop.f32.mrb[32].mxu0 }
 0xbf8   :  { %v2137_v61 = vadd.f32 %v3890_v5, %v3365_v60  ;;  %v2131_v10 = vpop.f32.mrb[33].mxu0 }
 0xbf9   :  { %v2132_v32 = vadd.f32 %v3365_v60, %v2131_v10 }
 0xbfa   :  { %4394 = vtanh.f32 %v2137_v61  ;;  %v3375_v37 = vmul.f32 -1.442695, %v2137_v61 }
 0xbfb   :  { %4396 = vtanh.f32 %v2132_v32  ;;  %v3374_v52 = vmul.f32 -1.442695, %v2132_v32 }
 0xbff   :  { %v3893_v13 = vpop.f32.mrb[34].mxu0 }
 0xc00   :  { %v2147_v26 = vadd.f32 %v3893_v13, %v3365_v60  ;;  %v2141_v21 = vpop.f32.mrb[35].mxu0 }
 0xc01   :  { %v2142_v14 = vadd.f32 %v3365_v60, %v2141_v21 }
 0xc02   :  { %4398 = vtanh.f32 %v2147_v26  ;;  %v3377_v44 = vmul.f32 -1.442695, %v2147_v26 }
 0xc03   :  { %4400 = vtanh.f32 %v2142_v14  ;;  %v3376_v63 = vmul.f32 -1.442695, %v2142_v14 }
 0xc04   :  { %v4395_v47 = vpop.eup %4394 }
 0xc05   :  { %v4397_v22 = vpop.eup %4396  ;;  %2236 = vrot.lane.b32.xlu1 %v4395_v47, %s4516_s16 }
 0xc06   :  { %2234 = vrot.lane.b32.xlu0 %v4397_v22, %s4516_s16 }
 0xc07   :  { %v3896_v25 = vpop.f32.mrb[36].mxu0 }
 0xc08   :  { %v2157_v9 = vadd.f32 %v3896_v25, %v3365_v60  ;;  %v2151_v39 = vpop.f32.mrb[37].mxu0 }
 0xc09   :  { %v2152_v27 = vadd.f32 %v3365_v60, %v2151_v39 }
 0xc0a   :  { %4402 = vtanh.f32 %v2157_v9  ;;  %v3379_v48 = vmul.f32 -1.442695, %v2157_v9 }
 0xc0b   :  { %4404 = vtanh.f32 %v2152_v27  ;;  %v3378_v36 = vmul.f32 -1.442695, %v2152_v27 }
 0xc0c   :  { %v4399_v28 = vpop.eup %4398 }
 0xc0d   :  { %v4401_v29 = vpop.eup %4400  ;;  %2240 = vrot.lane.b32.xlu1 %v4399_v28, %s4516_s16 }
 0xc0e   :  { %2238 = vrot.lane.b32.xlu0 %v4401_v29, %s4516_s16 }
 0xc0f   :  { %v3899_v62 = vpop.f32.mrb[38].mxu0 }
 0xc10   :  { %v2167_v55 = vadd.f32 %v3899_v62, %v3365_v60  ;;  %v2161_v34 = vpop.f32.mrb[39].mxu0 }
 0xc11   :  { %v2162_v30 = vadd.f32 %v3365_v60, %v2161_v34 }
 0xc12   :  { %4406 = vtanh.f32 %v2167_v55  ;;  %v3381_v10 = vmul.f32 -1.442695, %v2167_v55 }
 0xc13   :  { %4408 = vtanh.f32 %v2162_v30  ;;  %v3380_v61 = vmul.f32 -1.442695, %v2162_v30 }
 0xc14   :  { %v4403_v23 = vpop.eup %4402  ;;  %4410 = vpow2.f32 %v3374_v52 }
 0xc15   :  { %v4405_v15 = vpop.eup %4404  ;;  %2244 = vrot.lane.b32.xlu1 %v4403_v23, %s4516_s16  ;;  %4412 = vpow2.f32 %v3375_v37 }
 0xc16   :  { %2242 = vrot.lane.b32.xlu0 %v4405_v15, %s4516_s16  ;;  %4414 = vpow2.f32 %v3376_v63 }
 0xc17   :  { %4416 = vpow2.f32 %v3377_v44 }
 0xc1c   :  { %v4407_v49 = vpop.eup %4406 }
 0xc1d   :  { %v4409_v17 = vpop.eup %4408  ;;  %2248 = vrot.lane.b32.xlu1 %v4407_v49, %s4516_s16 }
 0xc1e   :  { %2246 = vrot.lane.b32.xlu0 %v4409_v17, %s4516_s16  ;;  %v4411_v41 = vpop.eup %4410 }
 0xc1f   :  { %v4413_v24 = vpop.eup %4412  ;;  %v2194_v1 = vadd.f32 1.0, %v4411_v41 }
 0xc20   :  { %v2195_v45 = vadd.f32 1.0, %v4413_v24  ;;  %v4415_v8 = vpop.eup %4414 }
 0xc21   :  { %4418 = vrcp.f32 %v2194_v1  ;;  %v4417_v7 = vpop.eup %4416  ;;  %v2196_v60 = vadd.f32 1.0, %v4415_v8  ;;  %v3398_v8 = vld [vmem:[%s5749_s2 + $0x1a0] sm:$0xff] }
 0xc22   :  { %4420 = vrcp.f32 %v2195_v45  ;;  %v2197_v5 = vadd.f32 1.0, %v4417_v7 }
 0xc23   :  { %4422 = vpow2.f32 %v3378_v36  ;;  %v3396_v36 = vld [vmem:[%s5749_s2 + $0x190] sm:$0xff] }
 0xc24   :  { %4424 = vpow2.f32 %v3379_v48  ;;  %v3397_v48 = vld [vmem:[%s5749_s2 + $0x198] sm:$0xff] }
 0xc25   :  { %4426 = vrcp.f32 %v2196_v60  ;;  %v4152_v7 = vpack.c.bf16 %v3397_v48, %v3396_v36  ;;  %v3399_v60 = vld [vmem:[%s5749_s2 + $0x1a8] sm:$0xff] }
 0xc26   :  { %4428 = vrcp.f32 %v2197_v5  ;;  %v4156_v5 = vpack.c.bf16 %v3399_v60, %v3398_v8 }
 0xc27   :  { %4430 = vpow2.f32 %v3380_v61  ;;  %v3400_v61 = vld [vmem:[%s5749_s2 + $0x1b0] sm:$0xff]  ;;  %4153 = vmatprep.subr.bf16.mxu1 %v4152_v7 }
 0xc28   :  { %4432 = vpow2.f32 %v3381_v10  ;;  %v3401_v10 = vld [vmem:[%s5749_s2 + $0x1b8] sm:$0xff] }
 0xc2b   :  { %v4419_v0 = vpop.eup %4418 }
 0xc2c   :  { %v4421_v20 = vpop.eup %4420 }
 0xc2d   :  { %v4423_v26 = vpop.eup %4422 }
 0xc2e   :  { %v4425_v14 = vpop.eup %4424  ;;  %v2198_v47 = vadd.f32 1.0, %v4423_v26  ;;  %v3405_v26 = vld [vmem:[%s5749_s2 + $0x1d8] sm:$0xff] }
 0xc2f   :  { %v2199_v22 = vadd.f32 1.0, %v4425_v14  ;;  %v4427_v9 = vpop.eup %4426  ;;  %v3387_v14 = vld [vmem:[%s5752_s5 + $0x4] ss:$0 sm:$0xff] }
 0xc30   :  { %v4429_v28 = vpop.eup %4428  ;;  %4434 = vrcp.f32 %v2198_v47 }
 0xc31   :  { %v4431_v29 = vpop.eup %4430  ;;  %4436 = vrcp.f32 %v2199_v22 }
 0xc32   :  { %v4433_v55 = vpop.eup %4432  ;;  %v2200_v34 = vadd.f32 1.0, %v4431_v29 }
 0xc33   :  { %v2201_v30 = vadd.f32 1.0, %v4433_v55 }
 0xc34   :  { %4438 = vrcp.f32 %v2200_v34 }
 0xc35   :  { %4440 = vrcp.f32 %v2201_v30 }
 0xc3a   :  { %v4435_v15 = vpop.eup %4434 }
 0xc3b   :  { %v4437_v17 = vpop.eup %4436 }
 0xc3e   :  { %v4439_v44 = vpop.eup %4438 }
 0xc3f   :  { %v4441_v24 = vpop.eup %4440 }
 0xc77   :  { %v2237_v57 = vpop.permute.xlu1 %2236 }
 0xc78   :  { %v2235_v32 = vpop.permute.xlu0 %2234  ;;  %v2259_v21 = vmul.f32 %v4421_v20, %v2237_v57  ;;  %v4160_v57 = vpack.c.bf16 %v3401_v10, %v3400_v61 }
 0xc79   :  { %v2258_v13 = vmul.f32 %v4419_v0, %v2235_v32  ;;  %v3402_v0 = vld [vmem:[%s5749_s2 + $0x1c0] sm:$0xff]  ;;  %v3403_v32 = vld [vmem:[%s5749_s2 + $0x1c8] sm:$0xff] }
 0xc7a   :  { %v4164_v20 = vpack.c.bf16 %v3403_v32, %v3402_v0 }
 0xc7b   :  { %3908 = vmatprep.mubr.msk.f32.mxu1 %vm141_vm1, %v2258_v13  ;;  %v3404_v13 = vld [vmem:[%s5749_s2 + $0x1d0] sm:$0xff] }
 0xc7c   :  { %3909 = vmatmul.mubr.msk.f32.vlgmr.msra.gmra.mrb[32].mxu1 %vm141_vm1, %v2259_v21  ;;  %v4168_v21 = vpack.c.bf16 %v3405_v26, %v3404_v13 }
 0xc7d   :  { %4155 = vmatpush3.bf16.msra.mxu1 %v4152_v7 }
 0xc7e   :  { %4157 = vmatprep.subr.bf16.mxu1 %v4156_v5 }
 0xc7f   :  { %v2241_v25 = vpop.permute.xlu1 %2240 }
 0xc80   :  { %v2239_v39 = vpop.permute.xlu0 %2238  ;;  %v2261_v62 = vmul.f32 %v4429_v28, %v2241_v25 }
 0xc81   :  { %v2260_v27 = vmul.f32 %v4427_v9, %v2239_v39  ;;  %4159 = vmatpush3.bf16.msra.mxu1 %v4156_v5 }
 0xc82   :  { %4161 = vmatprep.subr.bf16.mxu1 %v4160_v57 }
 0xc83   :  { %3911 = vmatprep.mubr.msk.f32.mxu1 %vm141_vm1, %v2260_v27 }
 0xc84   :  { %3912 = vmatmul.mubr.msk.f32.gmra.mrb[34].mxu1 %vm141_vm1, %v2261_v62 }
 0xc85   :  { %4163 = vmatpush3.bf16.msra.mxu1 %v4160_v57 }
 0xc86   :  { %4165 = vmatprep.subr.bf16.mxu1 %v4164_v20 }
 0xc87   :  { %v2245_v23 = vpop.permute.xlu1 %2244 }
 0xc88   :  { %v2243_v49 = vpop.permute.xlu0 %2242  ;;  %v2263_v37 = vmul.f32 %v4437_v17, %v2245_v23 }
 0xc89   :  { %v2262_v52 = vmul.f32 %v4435_v15, %v2243_v49  ;;  %4167 = vmatpush3.bf16.msra.mxu1 %v4164_v20 }
 0xc8a   :  { %4169 = vmatprep.subr.bf16.mxu1 %v4168_v21 }
 0xc8b   :  { %3914 = vmatprep.mubr.msk.f32.mxu1 %vm141_vm1, %v2262_v52 }
 0xc8c   :  { %3915 = vmatmul.mubr.msk.f32.gmra.mrb[36].mxu1 %vm141_vm1, %v2263_v37 }
 0xc8d   :  { %4171 = vmatpush3.bf16.msra.mxu1 %v4168_v21 }
 0xc8f   :  { %v2249_v63 = vpop.permute.xlu1 %2248 }
 0xc90   :  { %v2247_v41 = vpop.permute.xlu0 %2246  ;;  %v2265_v45 = vmul.f32 %v4441_v24, %v2249_v63 }
 0xc91   :  { %v2264_v1 = vmul.f32 %v4439_v44, %v2247_v41 }
 0xc93   :  { %3917 = vmatprep.mubr.msk.f32.mxu1 %vm141_vm1, %v2264_v1 }
 0xc94   :  { %3918 = vmatmul.mubr.msk.f32.gmra.mrb[38].mxu1 %vm141_vm1, %v2265_v45 }
 0xd4f   :  { %v3910_v47 = vpop.f32.mrb[32].mxu1 }
 0xd50   :  { %v2375_v22 = vadd.f32 %v3910_v47, %v3387_v14  ;;  %v2369_v25 = vpop.f32.mrb[33].mxu1 }
 0xd51   :  { %v2370_v9 = vadd.f32 %v3387_v14, %v2369_v25 }
 0xd52   :  { %v5560_v39 = vadd.f32 %v2375_v22, %v5384_v31  ;;  %v2417_v28 = vadd.f32 %v2375_v22, %v5387_v54 }
 0xd53   :  { %v5564_v27 = vadd.f32 %v2370_v9, %v5390_v35  ;;  %v2416_v29 = vadd.f32 %v2370_v9, %v5393_v42 }
 0xd54   :  { %v2429_v62 = vrot.slane %v2417_v28, 4 }
 0xd55   :  { %v2428_v55 = vrot.slane %v2416_v29, 4 }
 0xd57   :  { %2435 = vrot.lane.b32.xlu0 %v2428_v55, %s4516_s16  ;;  %v3913_v34 = vpop.f32.mrb[34].mxu1  ;;  %v2430_v30 = vsel %vm1029_vm5, %v2428_v55, %v2429_v62 }
 0xd58   :  { %v2385_v23 = vadd.f32 %v3913_v34, %v3387_v14  ;;  %2437 = vrot.lane.b32.xlu1 %v2430_v30, %s4516_s16  ;;  %v2379_v15 = vpop.f32.mrb[35].mxu1 }
 0xd59   :  { %v2380_v31 = vadd.f32 %v3387_v14, %v2379_v15 }
 0xd5a   :  { %v5571_v49 = vadd.f32 %v2385_v23, %v5401_v38  ;;  %v2419_v54 = vadd.f32 %v2385_v23, %v5404_v40 }
 0xd5b   :  { %v5575_v35 = vadd.f32 %v2380_v31, %v5407_v53  ;;  %v2418_v42 = vadd.f32 %v2380_v31, %v5410_v56 }
 0xd5c   :  { %v2433_v17 = vrot.slane %v2419_v54, 4 }
 0xd5d   :  { %v2431_v52 = vrot.slane %v2418_v42, 4 }
 0xd5f   :  { %v2434_v37 = vsel %vm1029_vm5, %v2431_v52, %v2433_v17  ;;  %v2432_v63 = vsel %vm1029_vm5, %v2429_v62, %v2431_v52  ;;  %v3916_v44 = vpop.f32.mrb[36].mxu1  ;;  %v3426_v17 = vld [vmem:[%s5751_s4 + $0xb0] sm:$0xff]  ;;  %v3427_v52 = vld [vmem:[%s5751_s4 + $0xb8] sm:$0xff] }
 0xd60   :  { %2441 = vrot.lane.b32.xlu1 %v2434_v37, %s4516_s16  ;;  %2439 = vrot.lane.b32.xlu0 %v2432_v63, %s4516_s16  ;;  %v2395_v38 = vadd.f32 %v3916_v44, %v3387_v14  ;;  %v2389_v41 = vpop.f32.mrb[37].mxu1  ;;  %v4176_v63 = vpack.c.bf16 %v3427_v52, %v3426_v17 }
 0xd61   :  { %v2390_v24 = vadd.f32 %v3387_v14, %v2389_v41 }
 0xd62   :  { %v5583_v40 = vadd.f32 %v2395_v38, %v5419_v51  ;;  %v2421_v53 = vadd.f32 %v2395_v38, %v5422_v43 }
 0xd63   :  { %v5587_v56 = vadd.f32 %v2390_v24, %v5425_v2  ;;  %v2420_v1 = vadd.f32 %v2390_v24, %v5428_v19 }
 0xd64   :  { %v2452_v45 = vrot.slane %v2421_v53, 4 }
 0xd65   :  { %v2451_v36 = vrot.slane %v2420_v1, 4 }
 0xd67   :  { %2458 = vrot.lane.b32.xlu0 %v2451_v36, %s4516_s16  ;;  %v3919_v48 = vpop.f32.mrb[38].mxu1  ;;  %v2453_v8 = vsel %vm1029_vm5, %v2451_v36, %v2452_v45 }
 0xd68   :  { %v2405_v7 = vadd.f32 %v3919_v48, %v3387_v14  ;;  %2460 = vrot.lane.b32.xlu1 %v2453_v8, %s4516_s16  ;;  %v2399_v60 = vpop.f32.mrb[39].mxu1 }
 0xd69   :  { %v2400_v51 = vadd.f32 %v3387_v14, %v2399_v60 }
 0xd6a   :  { %v5594_v5 = vadd.f32 %v2405_v7, %v5436_v18  ;;  %v2423_v43 = vadd.f32 %v2405_v7, %v5439_v6 }
 0xd6b   :  { %v5598_v2 = vadd.f32 %v2400_v51, %v5442_v16  ;;  %v2422_v19 = vadd.f32 %v2400_v51, %v5445_v33 }
 0xd6c   :  { %v2456_v61 = vrot.slane %v2423_v43, 4 }
 0xd6d   :  { %v2454_v10 = vrot.slane %v2422_v19, 4 }
 0xd6f   :  { %v2457_v57 = vsel %vm1029_vm5, %v2454_v10, %v2456_v61  ;;  %v2455_v0 = vsel %vm1029_vm5, %v2452_v45, %v2454_v10 }
 0xd70   :  { %2464 = vrot.lane.b32.xlu1 %v2457_v57, %s4516_s16  ;;  %2462 = vrot.lane.b32.xlu0 %v2455_v0, %s4516_s16 }
 0xdc9   :  { %v2436_v32 = vpop.permute.xlu0 %2435 }
 0xdca   :  { %v2470_v18 = vsel %vm1029_vm5, 0.0, %v2436_v32  ;;  %v2438_v20 = vpop.permute.xlu1 %2437 }
 0xdcb   :  { %v2472_v6 = vsel %vm141_vm1, %v2470_v18, %v2416_v29  ;;  %v2473_v16 = vsel %vm141_vm1, %v2438_v20, %v2417_v28 }
 0xdcc   :  { %v2481_v33 = vsel %vm150_vm2, %v2473_v16, %v4711_v50  ;;  %v2480_v13 = vsel %vm150_vm2, %v2472_v6, %v4702_v46 }
 0xdcd   :  { %3940 = vmatprep.mubr.msk.f32.mxu1 %vm176_vm3, %v2480_v13 }
 0xdce   :  { %3941 = vmatmul.mubr.msk.f32.vlgmr.msra.gmra.mrb[40].mxu1 %vm176_vm3, %v2481_v33 }
 0xdd2   :  { %v2440_v26 = vpop.permute.xlu0 %2439  ;;  %v2442_v21 = vpop.permute.xlu1 %2441 }
 0xdd3   :  { %v2474_v14 = vsel %vm141_vm1, %v2440_v26, %v2418_v42  ;;  %v2475_v47 = vsel %vm141_vm1, %v2442_v21, %v2419_v54 }
 0xdd4   :  { %v2482_v22 = vsel %vm150_vm2, %v2474_v14, %v4733_v59  ;;  %v2483_v25 = vsel %vm150_vm2, %v2475_v47, %v4731_v58 }
 0xdd5   :  { %3943 = vmatprep.mubr.msk.f32.mxu1 %vm176_vm3, %v2482_v22 }
 0xdd6   :  { %3944 = vmatmul.mubr.msk.f32.gmra.mrb[42].mxu1 %vm176_vm3, %v2483_v25 }
 0xdd9   :  { %v2459_v46 = vpop.permute.xlu0 %2458 }
 0xdda   :  { %v2471_v50 = vsel %vm1029_vm5, 0.0, %v2459_v46  ;;  %v2461_v9 = vpop.permute.xlu1 %2460 }
 0xddb   :  { %v2476_v28 = vsel %vm141_vm1, %v2471_v50, %v2420_v1  ;;  %v2477_v29 = vsel %vm141_vm1, %v2461_v9, %v2421_v53 }
 0xddc   :  { %v2484_v62 = vsel %vm150_vm2, %v2476_v28, %v4755_v4  ;;  %v2485_v59 = vsel %vm150_vm2, %v2477_v29, %v4753_v3  ;;  %v3424_v3 = vld [vmem:[%s5751_s4 + $0xa0] sm:$0xff]  ;;  %v3425_v4 = vld [vmem:[%s5751_s4 + $0xa8] sm:$0xff] }
 0xddd   :  { %3946 = vmatprep.mubr.msk.f32.mxu1 %vm176_vm3, %v2484_v62  ;;  %v4172_v31 = vpack.c.bf16 %v3425_v4, %v3424_v3 }
 0xdde   :  { %3947 = vmatmul.mubr.msk.f32.gmra.mrb[44].mxu1 %vm176_vm3, %v2485_v59 }
 0xddf   :  { %4173 = vmatprep.subr.bf16.mxu0 %v4172_v31 }
 0xde0   :  { %4175 = vmatpush3.bf16.msra.mxu0 %v4172_v31 }
 0xde1   :  { %4177 = vmatprep.subr.bf16.mxu0 %v4176_v63 }
 0xde2   :  { %v2463_v58 = vpop.permute.xlu0 %2462  ;;  %v2465_v55 = vpop.permute.xlu1 %2464 }
 0xde3   :  { %v2478_v34 = vsel %vm141_vm1, %v2463_v58, %v2422_v19  ;;  %v2479_v30 = vsel %vm141_vm1, %v2465_v55, %v2423_v43 }
 0xde4   :  { %v2486_v23 = vsel %vm150_vm2, %v2478_v34, %v4775_v12  ;;  %v2487_v15 = vsel %vm150_vm2, %v2479_v30, %v4773_v11  ;;  %v3407_v12 = vld [vmem:[%s5750_s3 + $0x5] ss:$0 sm:$0xff]  ;;  %4179 = vmatpush3.bf16.msra.mxu0 %v4176_v63 }
 0xde5   :  { %3949 = vmatprep.mubr.msk.f32.mxu1 %vm176_vm3, %v2486_v23 }
 0xde6   :  { %3950 = vmatmul.mubr.msk.f32.gmra.mrb[46].mxu1 %vm176_vm3, %v2487_v15 }
 0xea1   :  { %v3942_v11 = vpop.f32.mrb[40].mxu1 }
 0xea2   :  { %v2603_v54 = vadd.f32 %v3942_v11, %v3407_v12  ;;  %v2597_v42 = vpop.f32.mrb[41].mxu1 }
 0xea3   :  { %v2598_v37 = vadd.f32 %v3407_v12, %v2597_v42 }
 0xea4   :  { %4442 = vtanh.f32 %v2603_v54  ;;  %v3417_v20 = vmul.f32 -1.442695, %v2603_v54 }
 0xea5   :  { %4444 = vtanh.f32 %v2598_v37  ;;  %v3416_v18 = vmul.f32 -1.442695, %v2598_v37 }
 0xea9   :  { %v3945_v44 = vpop.f32.mrb[42].mxu1 }
 0xeaa   :  { %v2613_v38 = vadd.f32 %v3945_v44, %v3407_v12  ;;  %v2607_v41 = vpop.f32.mrb[43].mxu1 }
 0xeab   :  { %v2608_v24 = vadd.f32 %v3407_v12, %v2607_v41 }
 0xeac   :  { %4446 = vtanh.f32 %v2613_v38  ;;  %v3419_v16 = vmul.f32 -1.442695, %v2613_v38 }
 0xead   :  { %4448 = vtanh.f32 %v2608_v24  ;;  %v3418_v6 = vmul.f32 -1.442695, %v2608_v24 }
 0xeae   :  { %v4443_v53 = vpop.eup %4442 }
 0xeaf   :  { %v4445_v1 = vpop.eup %4444  ;;  %2702 = vrot.lane.b32.xlu1 %v4443_v53, %s4516_s16 }
 0xeb0   :  { %2700 = vrot.lane.b32.xlu0 %v4445_v1, %s4516_s16 }
 0xeb1   :  { %v3948_v45 = vpop.f32.mrb[44].mxu1 }
 0xeb2   :  { %v2623_v36 = vadd.f32 %v3948_v45, %v3407_v12  ;;  %v2617_v48 = vpop.f32.mrb[45].mxu1 }
 0xeb3   :  { %v2618_v7 = vadd.f32 %v3407_v12, %v2617_v48 }
 0xeb4   :  { %4450 = vtanh.f32 %v2623_v36  ;;  %v3421_v47 = vmul.f32 -1.442695, %v2623_v36 }
 0xeb5   :  { %4452 = vtanh.f32 %v2618_v7  ;;  %v3420_v14 = vmul.f32 -1.442695, %v2618_v7 }
 0xeb6   :  { %v4447_v8 = vpop.eup %4446 }
 0xeb7   :  { %v4449_v60 = vpop.eup %4448  ;;  %2706 = vrot.lane.b32.xlu1 %v4447_v8, %s4516_s16 }
 0xeb8   :  { %2704 = vrot.lane.b32.xlu0 %v4449_v60, %s4516_s16 }
 0xeb9   :  { %v3951_v51 = vpop.f32.mrb[46].mxu1 }
 0xeba   :  { %v2633_v43 = vadd.f32 %v3951_v51, %v3407_v12  ;;  %v2627_v19 = vpop.f32.mrb[47].mxu1  ;;  %v2890_v51 = vld [vmem:[%s5753_s6] sm:$0xff] }
 0xebb   :  { %v2628_v61 = vadd.f32 %v3407_v12, %v2627_v19 }
 0xebc   :  { %4454 = vtanh.f32 %v2633_v43  ;;  %v3423_v28 = vmul.f32 -1.442695, %v2633_v43  ;;  %v2891_v43 = vld [vmem:[%s5753_s6 + $0x8] sm:$0xff] }
 0xebd   :  { %4456 = vtanh.f32 %v2628_v61  ;;  %v3422_v9 = vmul.f32 -1.442695, %v2628_v61  ;;  %v4180_v19 = vpack.c.bf16 %v2891_v43, %v2890_v51  ;;  %v2892_v61 = vld [vmem:[%s5753_s6 + $0x10] sm:$0xff] }
 0xebe   :  { %v4451_v10 = vpop.eup %4450  ;;  %4458 = vpow2.f32 %v3416_v18 }
 0xebf   :  { %v4453_v57 = vpop.eup %4452  ;;  %2710 = vrot.lane.b32.xlu1 %v4451_v10, %s4516_s16  ;;  %4460 = vpow2.f32 %v3417_v20  ;;  %4181 = vmatprep.subr.bf16.mxu0 %v4180_v19  ;;  %v2893_v10 = vld [vmem:[%s5753_s6 + $0x18] sm:$0xff]  ;;  %v3429_v20 = vld [vmem:[%s5752_s5 + $0x5] ss:$0 sm:$0xff] }
 0xec0   :  { %2708 = vrot.lane.b32.xlu0 %v4453_v57, %s4516_s16  ;;  %4462 = vpow2.f32 %v3418_v6  ;;  %v4184_v57 = vpack.c.bf16 %v2893_v10, %v2892_v61 }
 0xec1   :  { %4464 = vpow2.f32 %v3419_v16 }
 0xec6   :  { %v4455_v0 = vpop.eup %4454 }
 0xec7   :  { %v4457_v32 = vpop.eup %4456  ;;  %2714 = vrot.lane.b32.xlu1 %v4455_v0, %s4516_s16  ;;  %v3038_v0 = vld [vmem:[%s5755_s8] sm:$0xff] }
 0xec8   :  { %2712 = vrot.lane.b32.xlu0 %v4457_v32, %s4516_s16  ;;  %v4459_v33 = vpop.eup %4458  ;;  %v3039_v32 = vld [vmem:[%s5755_s8 + $0x8] sm:$0xff] }
 0xec9   :  { %v4461_v13 = vpop.eup %4460  ;;  %v2660_v26 = vadd.f32 1.0, %v4459_v33  ;;  %v4188_v18 = vpack.c.bf16 %v3039_v32, %v3038_v0  ;;  %v3447_v0 = vld [vmem:[%s5756_s9] ss:$0 sm:$0xff]  ;;  %s4517_s9 = smov [#allocation2]  }
 0xeca   :  { %v2661_v21 = vadd.f32 1.0, %v4461_v13  ;;  %v4463_v22 = vpop.eup %4462  ;;  %s3191_s23 = sshll.u32 %s4517_s9, 4  ;;  %s3192_s23 = int_to_ptr.vmem [resolvable:$true] %s3191_s23 }
 0xecb   :  { %4466 = vrcp.f32 %v2660_v26  ;;  %v4465_v25 = vpop.eup %4464  ;;  %v2662_v46 = vadd.f32 1.0, %v4463_v22  ;;  %4189 = vmatprep.subr.bf16.mxu1 %v4188_v18  ;;  %s4490_s24 = scalar_lea.vmem %s3192_s23, 1024  ;;  %p4495_p1 = scmp.lt.s32.totalorder %s3192_s23, %s3192_s23 }
 0xecc   :  { %4468 = vrcp.f32 %v2661_v21  ;;  %v2663_v50 = vadd.f32 1.0, %v4465_v25  ;;  %4191 = vmatpush3.bf16.msra.mxu1 %v4188_v18  ;;  %p4491_p0 = scmp.ne.s32.totalorder %s3192_s23, %s4490_s24  ;;  %p4496_p2 = scmp.lt.s32.totalorder %s4490_s24, %s4490_s24 }
 0xecd   :  { %4470 = vpow2.f32 %v3420_v14 }
 0xece   :  { %4472 = vpow2.f32 %v3421_v47  ;;  %p4497_p3 = por %p4496_p2, %p4495_p1 }
 0xecf   :  { %4474 = vrcp.f32 %v2662_v46 }
 0xed0   :  { %4476 = vrcp.f32 %v2663_v50  ;;  %p4498_p4 = pnand %p4497_p3, %p4491_p0 }
 0xed1   :  { %4478 = vpow2.f32 %v3422_v9 }
 0xed2   :  { %4480 = vpow2.f32 %v3423_v28 }
 0xed5   :  { %v4467_v62 = vpop.eup %4466 }
 0xed6   :  { %v4469_v58 = vpop.eup %4468 }
 0xed7   :  { %v4471_v34 = vpop.eup %4470 }
 0xed8   :  { %v4473_v23 = vpop.eup %4472  ;;  %v2664_v15 = vadd.f32 1.0, %v4471_v34 }
 0xed9   :  { %v2665_v3 = vadd.f32 1.0, %v4473_v23  ;;  %v4475_v31 = vpop.eup %4474 }
 0xeda   :  { %v4477_v11 = vpop.eup %4476  ;;  %4482 = vrcp.f32 %v2664_v15 }
 0xedb   :  { %v4479_v42 = vpop.eup %4478  ;;  %4484 = vrcp.f32 %v2665_v3 }
 0xedc   :  { %v4481_v52 = vpop.eup %4480  ;;  %v2666_v37 = vadd.f32 1.0, %v4479_v42 }
 0xedd   :  { %v2667_v63 = vadd.f32 1.0, %v4481_v52 }
 0xede   :  { %4486 = vrcp.f32 %v2666_v37 }
 0xedf   :  { %4488 = vrcp.f32 %v2667_v63 }
 0xee4   :  { %v4483_v38 = vpop.eup %4482 }
 0xee5   :  { %v4485_v24 = vpop.eup %4484 }
 0xee8   :  { %v4487_v36 = vpop.eup %4486 }
 0xee9   :  { %v4489_v8 = vpop.eup %4488 }
 0xf21   :  { %v2703_v29 = vpop.permute.xlu1 %2702 }
 0xf22   :  { %v2701_v59 = vpop.permute.xlu0 %2700  ;;  %v2725_v30 = vmul.f32 %v4469_v58, %v2703_v29 }
 0xf23   :  { %v2724_v55 = vmul.f32 %v4467_v62, %v2701_v59 }
 0xf25   :  { %3960 = vmatprep.mubr.msk.f32.mxu0 %vm141_vm1, %v2724_v55 }
 0xf26   :  { %3961 = vmatmul.mubr.msk.f32.vlgmr.msra.gmra.mrb[40].mxu0 %vm141_vm1, %v2725_v30 }
 0xf27   :  { %4183 = vmatpush3.bf16.msra.mxu0 %v4180_v19 }
 0xf28   :  { %4185 = vmatprep.subr.bf16.mxu0 %v4184_v57 }
 0xf29   :  { %v2707_v4 = vpop.permute.xlu1 %2706 }
 0xf2a   :  { %v2705_v12 = vpop.permute.xlu0 %2704  ;;  %v2727_v17 = vmul.f32 %v4477_v11, %v2707_v4 }
 0xf2b   :  { %v2726_v54 = vmul.f32 %v4475_v31, %v2705_v12  ;;  %4187 = vmatpush3.bf16.msra.mxu0 %v4184_v57 }
 0xf2d   :  { %3963 = vmatprep.mubr.msk.f32.mxu0 %vm141_vm1, %v2726_v54 }
 0xf2e   :  { %3964 = vmatmul.mubr.msk.f32.gmra.mrb[42].mxu0 %vm141_vm1, %v2727_v17 }
 0xf31   :  { %v2711_v44 = vpop.permute.xlu1 %2710 }
 0xf32   :  { %v2709_v41 = vpop.permute.xlu0 %2708  ;;  %v2729_v1 = vmul.f32 %v4485_v24, %v2711_v44 }
 0xf33   :  { %v2728_v53 = vmul.f32 %v4483_v38, %v2709_v41 }
 0xf35   :  { %3966 = vmatprep.mubr.msk.f32.mxu0 %vm141_vm1, %v2728_v53 }
 0xf36   :  { %3967 = vmatmul.mubr.msk.f32.gmra.mrb[44].mxu0 %vm141_vm1, %v2729_v1 }
 0xf39   :  { %v2715_v45 = vpop.permute.xlu1 %2714 }
 0xf3a   :  { %v2713_v48 = vpop.permute.xlu0 %2712  ;;  %v2731_v60 = vmul.f32 %v4489_v8, %v2715_v45 }
 0xf3b   :  { %v2730_v7 = vmul.f32 %v4487_v36, %v2713_v48 }
 0xf3d   :  { %3969 = vmatprep.mubr.msk.f32.mxu0 %vm141_vm1, %v2730_v7 }
 0xf3e   :  { %3970 = vmatmul.mubr.msk.f32.gmra.mrb[46].mxu0 %vm141_vm1, %v2731_v60 }
 0xff9   :  { %v3962_v6 = vpop.f32.mrb[40].mxu0 }
 0xffa   :  { %v2841_v16 = vadd.f32 %v3962_v6, %v3429_v20  ;;  %v2835_v33 = vpop.f32.mrb[41].mxu0 }
 0xffb   :  { %v2836_v13 = vadd.f32 %v3429_v20, %v2835_v33 }
 0xffc   :  { %v2875_v26 = vadd.f32 %v2841_v16, %v5560_v39 }
 0xffd   :  { %v2874_v21 = vadd.f32 %v2836_v13, %v5564_v27 }
 0xffe   :  { %v2883_v47 = vmax.f32 %v2875_v26, 0.0 }
 0xfff   :  { %v2882_v14 = vmax.f32 %v2874_v21, 0.0 }
0x1001   :  { %v3965_v22 = vpop.f32.mrb[42].mxu0  ;;  %3980 = vmatprep.mubr.msk.f32.mxu0 %vm141_vm1, %v2882_v14 }
0x1002   :  { %v2851_v25 = vadd.f32 %v3965_v22, %v3429_v20  ;;  %v2845_v46 = vpop.f32.mrb[43].mxu0  ;;  %3981 = vmatmul.mubr.msk.f32.vlgmr.msra.gmra.mrb[48].mxu0 %vm141_vm1, %v2883_v47 }
0x1003   :  { %v2846_v50 = vadd.f32 %v3429_v20, %v2845_v46 }
0x1004   :  { %v2877_v9 = vadd.f32 %v2851_v25, %v5571_v49 }
0x1005   :  { %v2876_v28 = vadd.f32 %v2846_v50, %v5575_v35 }
0x1006   :  { %v2885_v62 = vmax.f32 %v2877_v9, 0.0 }
0x1007   :  { %v2884_v29 = vmax.f32 %v2876_v28, 0.0 }
0x1009   :  { %3983 = vmatprep.mubr.msk.f32.mxu0 %vm141_vm1, %v2884_v29  ;;  %v3968_v39 = vpop.f32.mrb[44].mxu0 }
0x100a   :  { %3984 = vmatmul.mubr.msk.f32.gmra.mrb[50].mxu0 %vm141_vm1, %v2885_v62  ;;  %v2861_v27 = vadd.f32 %v3968_v39, %v3429_v20  ;;  %v2855_v59 = vpop.f32.mrb[45].mxu0 }
0x100b   :  { %v2856_v58 = vadd.f32 %v3429_v20, %v2855_v59 }
0x100c   :  { %v2879_v55 = vadd.f32 %v2861_v27, %v5583_v40  ;;  %v3040_v40 = vld [vmem:[%s5755_s8 + $0x10] sm:$0xff] }
0x100d   :  { %v2878_v34 = vadd.f32 %v2856_v58, %v5587_v56  ;;  %v3041_v56 = vld [vmem:[%s5755_s8 + $0x18] sm:$0xff] }
0x100e   :  { %v2887_v23 = vmax.f32 %v2879_v55, 0.0  ;;  %v4192_v54 = vpack.c.bf16 %v3041_v56, %v3040_v40 }
0x100f   :  { %v2886_v30 = vmax.f32 %v2878_v34, 0.0 }
0x1010   :  { %4193 = vmatprep.subr.bf16.mxu1 %v4192_v54 }
0x1011   :  { %v3971_v15 = vpop.f32.mrb[46].mxu0  ;;  %3986 = vmatprep.mubr.msk.f32.mxu0 %vm141_vm1, %v2886_v30  ;;  %4195 = vmatpush3.bf16.msra.mxu1 %v4192_v54 }
0x1012   :  { %v2871_v49 = vadd.f32 %v3971_v15, %v3429_v20  ;;  %v2865_v35 = vpop.f32.mrb[47].mxu0  ;;  %3987 = vmatmul.mubr.msk.f32.gmra.mrb[52].mxu0 %vm141_vm1, %v2887_v23 }
0x1013   :  { %v2866_v3 = vadd.f32 %v3429_v20, %v2865_v35 }
0x1014   :  { %v2881_v4 = vadd.f32 %v2871_v49, %v5594_v5  ;;  %v3438_v5 = vld [vmem:[%s5754_s7] ss:$0 sm:$0xff] }
0x1015   :  { %v2880_v31 = vadd.f32 %v2866_v3, %v5598_v2 }
0x1016   :  { %v2889_v11 = vmax.f32 %v2881_v4, 0.0 }
0x1017   :  { %v2888_v12 = vmax.f32 %v2880_v31, 0.0 }
0x1019   :  { %3989 = vmatprep.mubr.msk.f32.mxu0 %vm141_vm1, %v2888_v12 }
0x101a   :  { %3990 = vmatmul.mubr.msk.f32.gmra.mrb[54].mxu0 %vm141_vm1, %v2889_v11 }
0x10d5   :  { %v3982_v2 = vpop.f32.mrb[48].mxu0 }
0x10d6   :  { %v2997_v42 = vadd.f32 %v3982_v2, %v3438_v5  ;;  %v2991_v17 = vpop.f32.mrb[49].mxu0 }
0x10d7   :  { %v2992_v52 = vadd.f32 %v3438_v5, %v2991_v17 }
0x10d8   :  { %v3031_v63 = vmax.f32 %v2997_v42, 0.0 }
0x10d9   :  { %v3030_v37 = vmax.f32 %v2992_v52, 0.0 }
0x10db   :  { %4000 = vmatprep.mubr.msk.f32.mxu1 %vm141_vm1, %v3030_v37 }
0x10dc   :  { %4001 = vmatmul.mubr.msk.f32.vlgmr.msra.gmra.mrb[48].mxu1 %vm141_vm1, %v3031_v63 }
0x10dd   :  { %v3985_v44 = vpop.f32.mrb[50].mxu0 }
0x10de   :  { %v3007_v38 = vadd.f32 %v3985_v44, %v3438_v5  ;;  %v3001_v41 = vpop.f32.mrb[51].mxu0 }
0x10df   :  { %v3002_v24 = vadd.f32 %v3438_v5, %v3001_v41 }
0x10e0   :  { %v3033_v1 = vmax.f32 %v3007_v38, 0.0 }
0x10e1   :  { %v3032_v53 = vmax.f32 %v3002_v24, 0.0 }
0x10e3   :  { %4003 = vmatprep.mubr.msk.f32.mxu1 %vm141_vm1, %v3032_v53 }
0x10e4   :  { %4004 = vmatmul.mubr.msk.f32.gmra.mrb[50].mxu1 %vm141_vm1, %v3033_v1 }
0x10e5   :  { %v3988_v45 = vpop.f32.mrb[52].mxu0 }
0x10e6   :  { %v3017_v36 = vadd.f32 %v3988_v45, %v3438_v5  ;;  %v3011_v48 = vpop.f32.mrb[53].mxu0 }
0x10e7   :  { %v3012_v8 = vadd.f32 %v3438_v5, %v3011_v48 }
0x10e8   :  { %v3035_v60 = vmax.f32 %v3017_v36, 0.0 }
0x10e9   :  { %v3034_v7 = vmax.f32 %v3012_v8, 0.0 }
0x10eb   :  { %4006 = vmatprep.mubr.msk.f32.mxu1 %vm141_vm1, %v3034_v7 }
0x10ec   :  { %4007 = vmatmul.mubr.msk.f32.gmra.mrb[52].mxu1 %vm141_vm1, %v3035_v60 }
0x10ed   :  { %v3991_v51 = vpop.f32.mrb[54].mxu0 }
0x10ee   :  { %v3027_v43 = vadd.f32 %v3991_v51, %v3438_v5  ;;  %v3021_v19 = vpop.f32.mrb[55].mxu0 }
0x10ef   :  { %v3022_v61 = vadd.f32 %v3438_v5, %v3021_v19 }
0x10f0   :  { %v3037_v57 = vmax.f32 %v3027_v43, 0.0 }
0x10f1   :  { %v3036_v10 = vmax.f32 %v3022_v61, 0.0 }
0x10f3   :  { %4009 = vmatprep.mubr.msk.f32.mxu1 %vm141_vm1, %v3036_v10 }
0x10f4   :  { %4010 = vmatmul.mubr.msk.f32.gmra.mrb[54].mxu1 %vm141_vm1, %v3037_v57 }
0x11af   :  { %v4002_v32 = vpop.f32.mrb[48].mxu1 }
0x11b0   :  { %v3145_v18 = vadd.f32 %v4002_v32, %v3447_v0  ;;  %v3139_v20 = vpop.f32.mrb[49].mxu1 }
0x11b1   :  { %v3140_v6 = vadd.f32 %v3447_v0, %v3139_v20 }
0x11b2   :  { %3179 = vst.msk [vmem:[#allocation2 + $0x8] sm:$0xff] %vm141_vm1, %v3145_v18 }
0x11b3   :  { %3178 = vst.msk [vmem:[#allocation2] sm:$0xff] %vm141_vm1, %v3140_v6 }
0x11b7   :  { %v4005_v16 = vpop.f32.mrb[50].mxu1 }
0x11b8   :  { %v3155_v33 = vadd.f32 %v4005_v16, %v3447_v0  ;;  %v3149_v13 = vpop.f32.mrb[51].mxu1 }
0x11b9   :  { %v3150_v26 = vadd.f32 %v3447_v0, %v3149_v13 }
0x11ba   :  { %3181 = vst.msk [vmem:[#allocation2 + $0x18] sm:$0xff] %vm141_vm1, %v3155_v33 }
0x11bb   :  { %3180 = vst.msk [vmem:[#allocation2 + $0x10] sm:$0xff] %vm141_vm1, %v3150_v26 }
0x11bf   :  { %v4008_v21 = vpop.f32.mrb[52].mxu1 }
0x11c0   :  { %v3165_v14 = vadd.f32 %v4008_v21, %v3447_v0  ;;  %v3159_v47 = vpop.f32.mrb[53].mxu1 }
0x11c1   :  { %v3160_v22 = vadd.f32 %v3447_v0, %v3159_v47 }
0x11c2   :  { %3183 = vst.msk [vmem:[#allocation2 + $0x28] sm:$0xff] %vm141_vm1, %v3165_v14 }
0x11c3   :  { %3182 = vst.msk [vmem:[#allocation2 + $0x20] sm:$0xff] %vm141_vm1, %v3160_v22 }
0x11c7   :  { %v4011_v25 = vpop.f32.mrb[54].mxu1 }
0x11c8   :  { %v3175_v46 = vadd.f32 %v4011_v25, %v3447_v0  ;;  %v3169_v50 = vpop.f32.mrb[55].mxu1 }
0x11c9   :  { %v3170_v9 = vadd.f32 %v3447_v0, %v3169_v50 }
0x11ca   :  { %3185 = vst.msk [vmem:[#allocation2 + $0x38] sm:$0xff] %vm141_vm1, %v3175_v46 }
0x11cb   :  { %3184 = vst.msk [vmem:[#allocation2 + $0x30] sm:$0xff] %vm141_vm1, %v3170_v9 }
0x11cc   :  { %4501 = shalt.err (!%p4498_p4)
}
0x11cd   :  { %s4502_s27 = scalar_lea.hbm %s5757_s10, 1024 }
0x11ce   :  { %p4503_p5 = scmp.ne.s32.totalorder %s5757_s10, %s4502_s27  ;;  %p4506_p6 = scmp.lt.u32.totalorder %s4502_s27, %s5757_s10 }
0x11d0   :  { %p4508_p7 = pnand %p4506_p6, %p4503_p5 }
0x11d2   :  { %4511 = shalt.err (!%p4508_p7)
}
0x11d3   :  { %s4518_s16 = smov 128   ;;  %s4519_s17 = smov 8  }
0x11d4   :  { %3197 = dma.vmem_to_hbm [thread:$0]  %s3192_s23, 1024, %s5757_s10, [#allocation3], %s4518_s16, %s4518_s16, %s4519_s17  }
0x11d5   :  { %4512 = dma.done.wait [#allocation3], 1024  }
0x11d6   :  { %4513 = vsyncadd [#allocation3], 4294966272 }
0x11d7   :  { %3201 = vsyncpa [#allocation3], 1 }

</bundles_post_ra>
